<compile_context>
chip_gen: v7x
topology: tpu7x:2x2x1
jax: 0.10.0
libtpu: 0.0.40
codegen_flags: <defaults>
</compile_context>

<pallas_src>
import functools

import jax
import jax.numpy as jnp
from jax.experimental import pallas as pl
from jax.experimental.pallas import tpu as pltpu


def _convlstm_kernel(x_ref, w_ref, b_ref, c_ref, h_out_ref, c_out_ref, *,
                     hidden, k, wp, tile_n, n_tiles):
    """Fused conv + LSTM gate math for one (batch, row-tile) grid step.

    x_ref     : (1, C, FLAT)        bf16  zero-padded combined [x, h], CHW-flat
    w_ref     : (4*hidden, k*k*C)   bf16  conv weight, k*k taps folded into K
    b_ref     : (4*hidden, 1)       f32   conv bias
    c_ref     : (1, hidden, tile_n) f32   current cell-state tile
    h_out_ref : (1, hidden, tile_n)       next hidden-state tile
    c_out_ref : (1, hidden, tile_n) f32   next cell-state tile
    """
    if n_tiles == 1:
        base = 0                                   # fully static slab offsets
    else:
        # tile_n is a multiple of 128 by construction when tiling is active.
        base = pl.multiple_of(pl.program_id(1) * tile_n, 128)

    # im2col in VMEM: k*k shifted views of the padded image (width shifts wrap
    # into the next padded row; those lanes are compute-only garbage that the
    # wrapper slices off). Stacked along K -> one big MXU matmul instead of
    # k*k tiny K=C dots + accumulator adds.
    slabs = []
    for dy in range(k):
        for dx in range(k):
            slabs.append(x_ref[0, :, pl.ds(base + dy * wp + dx, tile_n)])
    stacked = jnp.concatenate(slabs, axis=0)              # (k*k*C, tile_n) bf16

    gates = jnp.dot(w_ref[...], stacked,
                    preferred_element_type=jnp.float32)   # (4*hidden, tile_n)
    gates = gates + b_ref[...]

    # Gate order (i, f, g, o) == torch.split(gates, hidden_channels, dim=1).
    # Slices run along sublanes (hidden % 8 == 0) at full 128-lane width.
    i_g = jax.nn.sigmoid(gates[0 * hidden:1 * hidden, :])
    f_g = jax.nn.sigmoid(gates[1 * hidden:2 * hidden, :])
    g_g = jnp.tanh(gates[2 * hidden:3 * hidden, :])
    o_g = jax.nn.sigmoid(gates[3 * hidden:4 * hidden, :])

    c_next = f_g * c_ref[0] + i_g * g_g                   # f32
    h_out_ref[0] = (o_g * jnp.tanh(c_next)).astype(h_out_ref.dtype)
    c_out_ref[0] = c_next.astype(c_out_ref.dtype)


def _choose_row_tile(H, wp, C, hidden, kk, budget_bytes=6 << 20):
    """Largest divisor of H whose per-tile working set fits the budget.

    When tiling (tile < H) the flattened tile width must stay a multiple of
    128 lanes so the c/h/output BlockSpecs remain lane-aligned.
    """
    for th in range(H, 0, -1):
        if H % th:
            continue
        tn = th * wp
        if th != H and tn % 128 != 0:
            continue
        work = tn * (kk * C * 2            # stacked im2col (bf16)
                     + 4 * hidden * 4      # gates (f32)
                     + 7 * hidden * 4)     # gate temps + c tiles (f32)
        if work <= budget_bytes:
            return th
    return H


def conv_lstm_cell(x, h_cur, c_cur, weight, bias, kernel_size):
    """Pallas ConvLSTMCell forward.

    x      : (B, Cin, H, W)        NCHW (PyTorch convention)
    h_cur  : (B, Hc, H, W)
    c_cur  : (B, Hc, H, W)
    weight : (4*Hc, Cin+Hc, k, k)  PyTorch Conv2d weight layout (OIHW)
    bias   : (4*Hc,)
    returns (h_next, c_next) in NCHW; c_next is float32.
    """
    B, Cin, H, W = x.shape
    Hc = h_cur.shape[1]
    C = Cin + Hc
    k = kernel_size
    p = k // 2
    kk = k * k
    Hp, Wp = H + 2 * p, W + 2 * p
    flat = Hp * Wp
    # One spare padded row at the tail: the wrap-around lanes of the last
    # output row read up to 2*p elements past Hp*Wp.
    flat_pad = flat + Wp

    # ---- JAX glue: no data duplication, layout stays CHW (pads only) ----
    combined = jnp.concatenate([x, h_cur], axis=1)                # (B, C, H, W)
    comb_pad = jnp.pad(combined, ((0, 0), (0, 0), (p, p), (p, p)))
    x_in = comb_pad.reshape(B, C, flat)
    x_in = jnp.pad(x_in, ((0, 0), (0, 0), (0, flat_pad - flat)))
    x_in = x_in.astype(jnp.bfloat16)                              # MXU operand

    # OIHW -> (4*Hc, k*k*C) with K ordered (dy, dx, c), matching the in-kernel
    # im2col stacking order.
    # TODO(synk): K = k*k*C (=324 here) is left unpadded; Mosaic pads the
    # ragged contraction tile internally.
    w2 = jnp.transpose(weight, (0, 2, 3, 1)).reshape(4 * Hc, kk * C)
    w2 = w2.astype(jnp.bfloat16)
    b2 = bias.reshape(4 * Hc, 1).astype(jnp.float32)

    # Cell state: pad width to Wp (the extra lanes are compute-only garbage
    # columns that get sliced off below); keep it float32.
    c_pad = jnp.pad(c_cur, ((0, 0), (0, 0), (0, 0), (0, 2 * p)))
    c_in = c_pad.reshape(B, Hc, H * Wp).astype(jnp.float32)

    th = _choose_row_tile(H, Wp, C, Hc, kk)
    tn = th * Wp
    n_tiles = H // th

    kernel = functools.partial(_convlstm_kernel, hidden=Hc, k=k, wp=Wp,
                               tile_n=tn, n_tiles=n_tiles)

    # Explicit VMEM budget (matters on v7x's 64 MiB VMEM).
    est = (2 * C * flat_pad * 2                       # double-buffered image
           + 4 * Hc * kk * C * 2 + 4 * Hc * 4         # weight + bias
           + 2 * 3 * Hc * tn * 4                      # c-in + h/c-out blocks
           + 2 * (kk * C * tn * 2 + 8 * Hc * tn * 4)) # stacked + gate temps
    vmem_limit = int(min(48 << 20, max(32 << 20, 2 * est)))

    h_flat, c_flat = pl.pallas_call(
        kernel,
        out_shape=(jax.ShapeDtypeStruct((B, Hc, H * Wp), x.dtype),
                   jax.ShapeDtypeStruct((B, Hc, H * Wp), jnp.float32)),
        grid_spec=pltpu.PrefetchScalarGridSpec(
            num_scalar_prefetch=0,
            grid=(B, n_tiles),
            in_specs=[
                # Full padded image per batch element; constant across row
                # tiles so it is fetched once per batch element.
                pl.BlockSpec((1, C, flat_pad), lambda b, t: (b, 0, 0)),
                pl.BlockSpec((4 * Hc, kk * C), lambda b, t: (0, 0)),
                pl.BlockSpec((4 * Hc, 1), lambda b, t: (0, 0)),
                pl.BlockSpec((1, Hc, tn), lambda b, t: (b, 0, t)),
            ],
            out_specs=[
                pl.BlockSpec((1, Hc, tn), lambda b, t: (b, 0, t)),
                pl.BlockSpec((1, Hc, tn), lambda b, t: (b, 0, t)),
            ],
        ),
        input_output_aliases={3: 1},      # cell-state update in place
        compiler_params=pltpu.CompilerParams(
            dimension_semantics=("parallel", "parallel"),
            vmem_limit_bytes=vmem_limit),
    )(x_in, w2, b2, c_in)

    h_next = h_flat.reshape(B, Hc, H, Wp)[:, :, :, :W]
    c_next = c_flat.reshape(B, Hc, H, Wp)[:, :, :, :W]
    return h_next, c_next


def _reference(x, h_cur, c_cur, weight, bias, k):
    """Pure-JAX reference mirroring the PyTorch module (NCHW conv)."""
    combined = jnp.concatenate([x, h_cur], axis=1)
    gates = jax.lax.conv_general_dilated(
        combined, weight, window_strides=(1, 1), padding="SAME",
        dimension_numbers=("NCHW", "OIHW", "NCHW"))
    gates = gates + bias[None, :, None, None]
    Hc = h_cur.shape[1]
    i = jax.nn.sigmoid(gates[:, 0 * Hc:1 * Hc])
    f = jax.nn.sigmoid(gates[:, 1 * Hc:2 * Hc])
    g = jnp.tanh(gates[:, 2 * Hc:3 * Hc])
    o = jax.nn.sigmoid(gates[:, 3 * Hc:4 * Hc])
    c_next = f * c_cur + i * g
    h_next = o * jnp.tanh(c_next)
    return h_next, c_next


if __name__ == "__main__":
    # Small shapes consistent with the module's forward.
    B, Cin, Hc, H, W, k = 2, 4, 32, 16, 16, 3
    key = jax.random.PRNGKey(0)
    kx, kh, kc, kw, kb = jax.random.split(key, 5)

    x = jax.random.normal(kx, (B, Cin, H, W), jnp.float32)
    h0 = jax.random.normal(kh, (B, Hc, H, W), jnp.float32)
    c0 = jax.random.normal(kc, (B, Hc, H, W), jnp.float32)

    # Deterministic parameter init (PyTorch Conv2d default: U(-1/sqrt(fan_in), +)).
    fan_in = (Cin + Hc) * k * k
    bound = 1.0 / (fan_in ** 0.5)
    weight = jax.random.uniform(kw, (4 * Hc, Cin + Hc, k, k), jnp.float32,
                                -bound, bound)
    bias = jax.random.uniform(kb, (4 * Hc,), jnp.float32, -bound, bound)

    fwd = jax.jit(functools.partial(conv_lstm_cell, kernel_size=k))
    h_next, c_next = fwd(x, h0, c0, weight, bias)
    jax.block_until_ready((h_next, c_next))

    h_ref, c_ref = _reference(x, h0, c0, weight, bias, k)
    assert h_next.shape == (B, Hc, H, W) and c_next.shape == (B, Hc, H, W)
    # bf16 MXU operands -> slightly looser tolerance than pure f32.
    assert jnp.allclose(h_next, h_ref, rtol=2e-2, atol=2e-2), (
        float(jnp.max(jnp.abs(h_next - h_ref))))
    assert jnp.allclose(c_next, c_ref, rtol=2e-2, atol=2e-2), (
        float(jnp.max(jnp.abs(c_next - c_ref))))

    print("KERNEL_OK")
</pallas_src>

<mosaic_0001>
module attributes {stable_mosaic.version = 11 : i64} {
  func.func @_convlstm_kernel(%arg0: i32, %arg1: i32, %arg2: memref<1x36x342xbf16, #tpu.memory_space<vmem>>, %arg3: memref<128x324xbf16, #tpu.memory_space<vmem>>, %arg4: memref<128x1xf32, #tpu.memory_space<vmem>>, %arg5: memref<1x32x288xf32, #tpu.memory_space<vmem>>, %arg6: memref<1x32x288xf32, #tpu.memory_space<vmem>>, %arg7: memref<1x32x288xf32, #tpu.memory_space<vmem>>) attributes {dimension_semantics = [#tpu.dimension_semantics<parallel>, #tpu.dimension_semantics<parallel>], iteration_bounds = array<i64: 2, 1>, scalar_prefetch = 0 : i64, scratch_operands = 0 : i64, tpu.core_type = #tpu.core_type<tc>, window_params = [{transform_indices = @transform_0, window_bounds = array<i64: 1, 36, 342>}, {pipeline_mode = #tpu.pipeline_mode<synchronous>, transform_indices = @transform_1, window_bounds = array<i64: 128, 324>}, {pipeline_mode = #tpu.pipeline_mode<synchronous>, transform_indices = @transform_2, window_bounds = array<i64: 128, 1>}, {transform_indices = @transform_3, window_bounds = array<i64: 1, 32, 288>}, {transform_indices = @transform_4, window_bounds = array<i64: 1, 32, 288>}, {transform_indices = @transform_5, window_bounds = array<i64: 1, 32, 288>}]} {
    %c0 = arith.constant 0 : index
    %c0_0 = arith.constant 0 : index
    %c0_1 = arith.constant 0 : index
    %0 = vector.load %arg2[%c0, %c0_0, %c0_1] : memref<1x36x342xbf16, #tpu.memory_space<vmem>>, vector<1x36x288xbf16>
    %1 = vector.shape_cast %0 : vector<1x36x288xbf16> to vector<36x288xbf16>
    %c0_2 = arith.constant 0 : index
    %c0_3 = arith.constant 0 : index
    %c1 = arith.constant 1 : index
    %2 = vector.load %arg2[%c0_2, %c0_3, %c1] : memref<1x36x342xbf16, #tpu.memory_space<vmem>>, vector<1x36x288xbf16>
    %3 = vector.shape_cast %2 : vector<1x36x288xbf16> to vector<36x288xbf16>
    %c0_4 = arith.constant 0 : index
    %c0_5 = arith.constant 0 : index
    %c2 = arith.constant 2 : index
    %4 = vector.load %arg2[%c0_4, %c0_5, %c2] : memref<1x36x342xbf16, #tpu.memory_space<vmem>>, vector<1x36x288xbf16>
    %5 = vector.shape_cast %4 : vector<1x36x288xbf16> to vector<36x288xbf16>
    %c0_6 = arith.constant 0 : index
    %c0_7 = arith.constant 0 : index
    %c18 = arith.constant 18 : index
    %6 = vector.load %arg2[%c0_6, %c0_7, %c18] : memref<1x36x342xbf16, #tpu.memory_space<vmem>>, vector<1x36x288xbf16>
    %7 = vector.shape_cast %6 : vector<1x36x288xbf16> to vector<36x288xbf16>
    %c0_8 = arith.constant 0 : index
    %c0_9 = arith.constant 0 : index
    %c19 = arith.constant 19 : index
    %8 = vector.load %arg2[%c0_8, %c0_9, %c19] : memref<1x36x342xbf16, #tpu.memory_space<vmem>>, vector<1x36x288xbf16>
    %9 = vector.shape_cast %8 : vector<1x36x288xbf16> to vector<36x288xbf16>
    %c0_10 = arith.constant 0 : index
    %c0_11 = arith.constant 0 : index
    %c20 = arith.constant 20 : index
    %10 = vector.load %arg2[%c0_10, %c0_11, %c20] : memref<1x36x342xbf16, #tpu.memory_space<vmem>>, vector<1x36x288xbf16>
    %11 = vector.shape_cast %10 : vector<1x36x288xbf16> to vector<36x288xbf16>
    %c0_12 = arith.constant 0 : index
    %c0_13 = arith.constant 0 : index
    %c36 = arith.constant 36 : index
    %12 = vector.load %arg2[%c0_12, %c0_13, %c36] : memref<1x36x342xbf16, #tpu.memory_space<vmem>>, vector<1x36x288xbf16>
    %13 = vector.shape_cast %12 : vector<1x36x288xbf16> to vector<36x288xbf16>
    %c0_14 = arith.constant 0 : index
    %c0_15 = arith.constant 0 : index
    %c37 = arith.constant 37 : index
    %14 = vector.load %arg2[%c0_14, %c0_15, %c37] : memref<1x36x342xbf16, #tpu.memory_space<vmem>>, vector<1x36x288xbf16>
    %15 = vector.shape_cast %14 : vector<1x36x288xbf16> to vector<36x288xbf16>
    %c0_16 = arith.constant 0 : index
    %c0_17 = arith.constant 0 : index
    %c38 = arith.constant 38 : index
    %16 = vector.load %arg2[%c0_16, %c0_17, %c38] : memref<1x36x342xbf16, #tpu.memory_space<vmem>>, vector<1x36x288xbf16>
    %17 = vector.shape_cast %16 : vector<1x36x288xbf16> to vector<36x288xbf16>
    %18 = tpu.concatenate %1, %3, %5, %7, %9, %11, %13, %15, %17 in 0 : vector<36x288xbf16>, vector<36x288xbf16>, vector<36x288xbf16>, vector<36x288xbf16>, vector<36x288xbf16>, vector<36x288xbf16>, vector<36x288xbf16>, vector<36x288xbf16>, vector<36x288xbf16> -> vector<324x288xbf16>
    %c0_18 = arith.constant 0 : index
    %c0_19 = arith.constant 0 : index
    %19 = vector.load %arg3[%c0_18, %c0_19] : memref<128x324xbf16, #tpu.memory_space<vmem>>, vector<128x324xbf16>
    %cst = arith.constant dense<0.000000e+00> : vector<128x288xf32>
    %20 = tpu.matmul %19, %18, %cst {dimension_numbers = #tpu.dot_dimension_numbers<[1], [0], [0], [1], [0, 0, 1, 1], [], []>} : vector<128x324xbf16>, vector<324x288xbf16>, vector<128x288xf32> -> vector<128x288xf32>
    %c0_20 = arith.constant 0 : index
    %c0_21 = arith.constant 0 : index
    %21 = vector.load %arg4[%c0_20, %c0_21] : memref<128x1xf32, #tpu.memory_space<vmem>>, vector<128x1xf32>
    %22 = vector.broadcast %21 : vector<128x1xf32> to vector<128x288xf32>
    %23 = arith.addf %20, %22 : vector<128x288xf32>
    %24 = vector.extract_strided_slice %23 {offsets = [0, 0], sizes = [32, 288], strides = [1, 1]} : vector<128x288xf32> to vector<32x288xf32>
    %25 = arith.negf %24 : vector<32x288xf32>
    %26 = math.exp %25 : vector<32x288xf32>
    %cst_22 = arith.constant 1.000000e+00 : f32
    %27 = vector.broadcast %cst_22 : f32 to vector<32x288xf32>
    %28 = arith.addf %27, %26 : vector<32x288xf32>
    %29 = arith.divf %27, %28 : vector<32x288xf32>
    %30 = vector.extract_strided_slice %23 {offsets = [32, 0], sizes = [32, 288], strides = [1, 1]} : vector<128x288xf32> to vector<32x288xf32>
    %31 = arith.negf %30 : vector<32x288xf32>
    %32 = math.exp %31 : vector<32x288xf32>
    %cst_23 = arith.constant 1.000000e+00 : f32
    %33 = vector.broadcast %cst_23 : f32 to vector<32x288xf32>
    %34 = arith.addf %33, %32 : vector<32x288xf32>
    %35 = arith.divf %33, %34 : vector<32x288xf32>
    %36 = vector.extract_strided_slice %23 {offsets = [64, 0], sizes = [32, 288], strides = [1, 1]} : vector<128x288xf32> to vector<32x288xf32>
    %37 = math.tanh %36 : vector<32x288xf32>
    %38 = vector.extract_strided_slice %23 {offsets = [96, 0], sizes = [32, 288], strides = [1, 1]} : vector<128x288xf32> to vector<32x288xf32>
    %39 = arith.negf %38 : vector<32x288xf32>
    %40 = math.exp %39 : vector<32x288xf32>
    %cst_24 = arith.constant 1.000000e+00 : f32
    %41 = vector.broadcast %cst_24 : f32 to vector<32x288xf32>
    %42 = arith.addf %41, %40 : vector<32x288xf32>
    %43 = arith.divf %41, %42 : vector<32x288xf32>
    %c0_25 = arith.constant 0 : index
    %c0_26 = arith.constant 0 : index
    %c0_27 = arith.constant 0 : index
    %44 = vector.load %arg5[%c0_25, %c0_26, %c0_27] : memref<1x32x288xf32, #tpu.memory_space<vmem>>, vector<1x32x288xf32>
    %45 = vector.shape_cast %44 : vector<1x32x288xf32> to vector<32x288xf32>
    %46 = arith.mulf %35, %45 : vector<32x288xf32>
    %47 = arith.mulf %29, %37 : vector<32x288xf32>
    %48 = arith.addf %46, %47 : vector<32x288xf32>
    %49 = math.tanh %48 : vector<32x288xf32>
    %50 = arith.mulf %43, %49 : vector<32x288xf32>
    %c0_28 = arith.constant 0 : index
    %c0_29 = arith.constant 0 : index
    %c0_30 = arith.constant 0 : index
    %51 = vector.load %arg6[%c0_28, %c0_29, %c0_30] : memref<1x32x288xf32, #tpu.memory_space<vmem>>, vector<1x32x288xf32>
    %52 = vector.shape_cast %51 : vector<1x32x288xf32> to vector<32x288xf32>
    %53 = vector.shape_cast %50 : vector<32x288xf32> to vector<1x32x288xf32>
    tpu.vector_store %arg6[%c0_28, %c0_29, %c0_30], %53 {strides = array<i32>} : memref<1x32x288xf32, #tpu.memory_space<vmem>>, vector<1x32x288xf32>,
    %c0_31 = arith.constant 0 : index
    %c0_32 = arith.constant 0 : index
    %c0_33 = arith.constant 0 : index
    %54 = vector.load %arg7[%c0_31, %c0_32, %c0_33] : memref<1x32x288xf32, #tpu.memory_space<vmem>>, vector<1x32x288xf32>
    %55 = vector.shape_cast %54 : vector<1x32x288xf32> to vector<32x288xf32>
    %56 = vector.shape_cast %48 : vector<32x288xf32> to vector<1x32x288xf32>
    tpu.vector_store %arg7[%c0_31, %c0_32, %c0_33], %56 {strides = array<i32>} : memref<1x32x288xf32, #tpu.memory_space<vmem>>, vector<1x32x288xf32>,
    return
  }
  func.func @transform_0(%arg0: i32, %arg1: i32) -> (i32, i32, i32) {
    %c0_i32 = arith.constant 0 : i32
    %c0_i32_0 = arith.constant 0 : i32
    %c0_i32_1 = arith.constant 0 : i32
    return %arg0, %c0_i32, %c0_i32_0 : i32, i32, i32
  }
  func.func @transform_1(%arg0: i32, %arg1: i32) -> (i32, i32) {
    %c0_i32 = arith.constant 0 : i32
    %c0_i32_0 = arith.constant 0 : i32
    %c0_i32_1 = arith.constant 0 : i32
    return %c0_i32, %c0_i32_0 : i32, i32
  }
  func.func @transform_2(%arg0: i32, %arg1: i32) -> (i32, i32) {
    %c0_i32 = arith.constant 0 : i32
    %c0_i32_0 = arith.constant 0 : i32
    %c0_i32_1 = arith.constant 0 : i32
    return %c0_i32, %c0_i32_0 : i32, i32
  }
  func.func @transform_3(%arg0: i32, %arg1: i32) -> (i32, i32, i32) {
    %c0_i32 = arith.constant 0 : i32
    %c0_i32_0 = arith.constant 0 : i32
    return %arg0, %c0_i32, %arg1 : i32, i32, i32
  }
  func.func @transform_4(%arg0: i32, %arg1: i32) -> (i32, i32, i32) {
    %c0_i32 = arith.constant 0 : i32
    %c0_i32_0 = arith.constant 0 : i32
    return %arg0, %c0_i32, %arg1 : i32, i32, i32
  }
  func.func @transform_5(%arg0: i32, %arg1: i32) -> (i32, i32, i32) {
    %c0_i32 = arith.constant 0 : i32
    %c0_i32_0 = arith.constant 0 : i32
    return %arg0, %c0_i32, %arg1 : i32, i32, i32
  }
}

</mosaic_0001>

<bundles_post_ra>
// kernel: conv_lstm_cell.1
= control target key start
LH: loop header
LB: loop body
LE: loop exit
PB: predicated region body
PF: predicated region fallthrough
CT: control target
= control target key end

     0   :  { %s2513_s18 = smov 0   ;;  %s2515_s19 = smov 0   ;;  %s3507_s0 = inlined_call_operand.vmem [shape: bf16[2,36,342], index: 0, kind: input, shape index: {}]   ;;  %s3508_s1 = inlined_call_operand.vmem [shape: bf16[128,324], index: 1, kind: input, shape index: {}]   ;;  %s3509_s2 = inlined_call_operand.vmem [shape: f32[128,1], index: 2, kind: input, shape index: {}]   ;;  %s3510_s3 = inlined_call_operand.vmem [shape: f32[2,32,288], index: 3, kind: input, shape index: {}, may-alias: {3,5}]   ;;  %s3511_s4 = inlined_call_operand.vmem [shape: f32[2,32,288], index: 4, kind: output, shape index: {0}]   ;;  %s3512_s5 = inlined_call_operand.vmem [shape: f32[2,32,288], index: 5, kind: output, shape index: {1}, may-alias: {3,5}]  }
   0x1   :  { %s2517_s20 = smov 0  }
   0x2 LB: > { %s28_s21 = sadd.s32 1, %s2468_s19  ;;  %p1891_p0 = scmp.ge.s32.totalorder %s2472_s20, 1  ;;  %s2472_s20 = sphi %s2517_s20, %s16_s20   ;;  %s2468_s19 = sphi %s2515_s19, %s3514_s19   ;;  %s2464_s18 = sphi %s2513_s18, %s3513_s18  }
   0x3   : > { %p30_p1 = scmp.ge.s32.totalorder %s28_s21, 2  ;;  %p223_p2 = scmp.lt.s32.totalorder %s2472_s20, 3 }
   0x5   : > { %s3516_s21 = smov (%p30_p1, %s28_s21), 0  ;;  %p224_p3 = pnand %p1891_p0, %p223_p2 }
   0x6   : > { %p273_p4 = scmp.lt.s32.totalorder (!%p224_p3), %s2464_s18, 1  ;;  %vm359_vm0 = vcmask (!%p224_p3), 1041408   ;;  %s2474_s26 = smov (!%p224_p3), 127   ;;  %vm440_vm1 = vcmask (!%p224_p3), 1045504   ;;  %v2481_v58 = vmov (!%p224_p3), 0   ;;  %vm393_vm2 = vcmask (!%p224_p3), 1039360  }
   0x7   : > { %227 = sbr.rel (%p224_p3) target bundleno = 670 (0x29e), region = 36  ;;  %s2475_s27 = smov (!%p224_p3), 126   ;;  %1178 = vmatprep.mubr.bf16.mxu1 (!%p224_p3), %v2481_v58  ;;  %2207 = vset.pattern.permute.xlu1 (!%p224_p3), %v2481_v58  ;;  %vm430_vm3 = vcmask (!%p224_p3), 1031168   ;;  %vm649_vm4 = vcmask (!%p224_p3), 1043456   ;;  %vm474_vm5 = vcmask (!%p224_p3), 900096   ;;  %vm592_vm6 = vcmask (!%p224_p3), 744448  }
   0x8   : > { %s2476_s28 = smov (!%p224_p3), 110   ;;  %s2477_s29 = smov (!%p224_p3), 91   ;;  %2206 = vset.pattern.permute.xlu0 (!%p224_p3), %v2481_v58  ;;  %vm623_vm7 = vcmask (!%p224_p3), 736256   ;;  %vm505_vm8 = vcmask (!%p224_p3), 891904   ;;  %vm536_vm9 = vcmask (!%p224_p3), 883712   ;;  %vm959_vm10 = vcmask (!%p224_p3), 556032  }
   0x9   : > { %s2478_s30 = smov (!%p224_p3), 90   ;;  %s2479_s6 = smov (!%p224_p3), 109   ;;  %vm564_vm11 = vcmask (!%p224_p3), 752640   ;;  %vm1715_vm12 = vcmask (!%p224_p3), 261120  }
   0xa   : > { %s2480_s7 = smov (!%p224_p3), 108   ;;  %s2482_s8 = smov (!%p224_p3), 92  }
   0xe   : > { %s3518_s18 = smov (!%p273_p4, %s2464_s18), 1 }
   0xf   : > { %s2171_s22 = smul.u32 60, %s3518_s18 }
  0x11   : > { %s277_s25 = scalar_lea.vmem %s3507_s0, %s2171_s22 }
  0x12   : > { %v309_v0 = vld [vmem:[%s277_s25] sm:$0xff]  ;;  %v311_v1 = vld [vmem:[%s277_s25 + $0xc] sm:$0xff]  ;;  %v310_v2 = vld [vmem:[%s277_s25 + $0x8] sm:$0xf] }
  0x13   : > { %v2537_v3 = vcombine.high %v309_v0, %v311_v1  ;;  %v2539_v4 = vcombine.low %v309_v0, %v311_v1  ;;  %v312_v5 = vld [vmem:[%s277_s25 + $0x14] sm:$0xf]  ;;  %v313_v6 = vld [vmem:[%s277_s25 + $0x18] sm:$0xff]  ;;  %v2541_v7 = vld [vmem:[%s277_s25 + $0x24] sm:$0xff]  ;;  %v2611_v32 = vcombine.high %v309_v0, %v309_v0  ;;  %v2613_v33 = vcombine.low %v310_v2, %v310_v2 }
  0x14   : > { %v2543_v8 = vcombine.low %v310_v2, %v312_v5  ;;  %v2546_v9 = vcombine.high %v313_v6, %v2541_v7  ;;  %v314_v10 = vld [vmem:[%s277_s25 + $0x20] sm:$0xf]  ;;  %v316_v11 = vld [vmem:[%s277_s25 + $0x2c] sm:$0xf]  ;;  %v2549_v12 = vcombine.low %v313_v6, %v2541_v7  ;;  %v317_v13 = vld [vmem:[%s277_s25 + $0x30] sm:$0x33]  ;;  %v2618_v35 = vcombine.low %v309_v0, %v309_v0 }
  0x15   : > { %v2552_v14 = vrot.slane %v2537_v3, 6  ;;  %v2555_v15 = vrot.slane %v2539_v4, 6  ;;  %v2557_v16 = vcombine.low %v314_v10, %v316_v11  ;;  %v318_v17 = vld [vmem:[%s277_s25 + $0x38] sm:$0x3]  ;;  %993 = vmatprep.subr.bf16.mxu0 %v2537_v3  ;;  %v2575_v23 = vcombine.high %v317_v13, %v317_v13 }
  0x16   : > { %v365_v18 = vrot.slane %v2546_v9, 6  ;;  %994 = vmatpush1.bf16.msra.mxu0 %v2539_v4  ;;  %v2567_v19 = vrot.slane %v2543_v8, 6  ;;  %v363_v20 = vrot.slane %v2549_v12, 6  ;;  %v2577_v24 = vcombine.low %v318_v17, %v318_v17 }
  0x17   : > { %377 = vrot.lane.b32.xlu0 %v2552_v14, %s2474_s26  ;;  %375 = vrot.lane.b32.xlu1 %v2555_v15, %s2474_s26  ;;  %v367_v22 = vrot.slane %v2557_v16, 6  ;;  %v371_v27 = vrot.slane %v2575_v23, 6  ;;  %v2605_v31 = vcombine.low %v317_v13, %v317_v13  ;;  %v2626_v37 = vcombine.high %v311_v1, %v313_v6 }
  0x18   : > { %v2572_v21 = vsel %vm359_vm0, %v2552_v14, %v365_v18  ;;  %995 = vmatprep.subr.bf16.mxu0 %v2546_v9  ;;  %v2591_v26 = vsel %vm359_vm0, %v2555_v15, %v363_v20  ;;  %v373_v28 = vrot.slane %v2577_v24, 6  ;;  %v2628_v38 = vcombine.low %v312_v5, %v314_v10  ;;  %v2743_v10 = vld [vmem:[%s3508_s1 + $0x4] ss:$12 sps:$4 sm:$0xff]  }
  0x19   : > { %v2587_v25 = vsel %vm359_vm0, %v2567_v19, %v367_v22  ;;  %v2600_v29 = vsel %vm359_vm0, %v365_v18, %v371_v27  ;;  %v369_v34 = vrot.slane %v2605_v31, 6  ;;  %v2632_v39 = vcombine.low %v311_v1, %v313_v6  ;;  %1025 = vmatprep.mubr.bf16.mxu0 %v2743_v10 }
  0x1a   : > { %996 = vmatpush1.bf16.msra.mxu0 %v2549_v12  ;;  %v2603_v30 = vsel %vm359_vm0, %v367_v22, %v373_v28  ;;  %v2635_v40 = vcombine.high %v2541_v7, %v317_v13  ;;  %v2639_v41 = vcombine.low %v316_v11, %v318_v17  ;;  %v2642_v42 = vrot.slane %v2537_v3, 2 }
  0x1b   : > { %379 = vrot.lane.b32.xlu0 %v2567_v19, %s2474_s26  ;;  %383 = vrot.lane.b32.xlu1 %v2572_v21, %s2474_s26  ;;  %v2621_v36 = vsel %vm359_vm0, %v363_v20, %v369_v34  ;;  %v2648_v43 = vrot.slane %v2543_v8, 2  ;;  %v2651_v44 = vcombine.low %v2541_v7, %v317_v13  ;;  %v446_v45 = vrot.slane %v2546_v9, 2 }
  0x1c   : > { %v2658_v46 = vrot.slane %v2539_v4, 2  ;;  %v448_v48 = vrot.slane %v2557_v16, 2  ;;  %v444_v50 = vrot.slane %v2549_v12, 2  ;;  %v452_v52 = vrot.slane %v2575_v23, 2 }
  0x1d   : > { %v447_v47 = vsel %vm440_vm1, %v2642_v42, %v446_v45  ;;  %v454_v54 = vrot.slane %v2577_v24, 2  ;;  %v450_v56 = vrot.slane %v2605_v31, 2 }
  0x1e   : > { %v449_v49 = vsel %vm440_vm1, %v2648_v43, %v448_v48  ;;  %v445_v51 = vsel %vm440_vm1, %v2658_v46, %v444_v50  ;;  %v453_v53 = vsel %vm440_vm1, %v446_v45, %v452_v52 }
  0x1f   : > { %385 = vrot.lane.b32.xlu0 %v2587_v25, %s2474_s26  ;;  %381 = vrot.lane.b32.xlu1 %v2591_v26, %s2474_s26  ;;  %v455_v55 = vsel %vm440_vm1, %v448_v48, %v454_v54  ;;  %v451_v57 = vsel %vm440_vm1, %v444_v50, %v450_v56 }
  0x23   : > { %389 = vrot.lane.b32.xlu0 %v2600_v29, %s2474_s26  ;;  %391 = vrot.lane.b32.xlu1 %v2603_v30, %s2474_s26 }
  0x27   : > { %414 = vrot.lane.b32.xlu0 %v2611_v32, %s2475_s27  ;;  %416 = vrot.lane.b32.xlu1 %v2613_v33, %s2475_s27 }
  0x2b   : > { %387 = vrot.lane.b32.xlu0 %v2621_v36, %s2474_s26  ;;  %412 = vrot.lane.b32.xlu1 %v2618_v35, %s2475_s27 }
  0x2f   : > { %420 = vrot.lane.b32.xlu0 %v2626_v37, %s2475_s27  ;;  %422 = vrot.lane.b32.xlu1 %v2628_v38, %s2475_s27 }
  0x33   : > { %418 = vrot.lane.b32.xlu0 %v2632_v39, %s2475_s27  ;;  %426 = vrot.lane.b32.xlu1 %v2635_v40, %s2475_s27 }
  0x37   : > { %428 = vrot.lane.b32.xlu0 %v2639_v41, %s2475_s27  ;;  %458 = vrot.lane.b32.xlu1 %v2642_v42, %s2476_s28 }
  0x3b   : > { %460 = vrot.lane.b32.xlu0 %v2648_v43, %s2476_s28  ;;  %424 = vrot.lane.b32.xlu1 %v2651_v44, %s2475_s27 }
  0x3f   : > { %456 = vrot.lane.b32.xlu0 %v2658_v46, %s2476_s28  ;;  %582 = vrot.lane.b32.xlu1 %v447_v47, %s2477_s29 }
  0x43   : > { %584 = vrot.lane.b32.xlu0 %v449_v49, %s2477_s29  ;;  %464 = vrot.lane.b32.xlu1 %v447_v47, %s2476_s28 }
  0x47   : > { %466 = vrot.lane.b32.xlu0 %v449_v49, %s2476_s28  ;;  %580 = vrot.lane.b32.xlu1 %v445_v51, %s2477_s29 }
  0x4b   : > { %462 = vrot.lane.b32.xlu0 %v445_v51, %s2476_s28  ;;  %588 = vrot.lane.b32.xlu1 %v453_v53, %s2477_s29 }
  0x4f   : > { %590 = vrot.lane.b32.xlu0 %v455_v55, %s2477_s29  ;;  %470 = vrot.lane.b32.xlu1 %v453_v53, %s2476_s28 }
  0x53   : > { %472 = vrot.lane.b32.xlu0 %v455_v55, %s2476_s28  ;;  %586 = vrot.lane.b32.xlu1 %v451_v57, %s2477_s29 }
  0x57   : > { %468 = vrot.lane.b32.xlu0 %v451_v57, %s2476_s28  ;;  %607 = vrot.lane.b32.xlu1 %v2537_v3, %s2478_s30 }
  0x5b   : > { %609 = vrot.lane.b32.xlu0 %v2543_v8, %s2478_s30  ;;  %489 = vrot.lane.b32.xlu1 %v2537_v3, %s2479_s6 }
  0x5f   : > { %491 = vrot.lane.b32.xlu0 %v2543_v8, %s2479_s6  ;;  %605 = vrot.lane.b32.xlu1 %v2539_v4, %s2478_s30 }
  0x63   : > { %487 = vrot.lane.b32.xlu0 %v2539_v4, %s2479_s6  ;;  %613 = vrot.lane.b32.xlu1 %v2546_v9, %s2478_s30 }
  0x67   : > { %615 = vrot.lane.b32.xlu0 %v2557_v16, %s2478_s30  ;;  %495 = vrot.lane.b32.xlu1 %v2546_v9, %s2479_s6 }
  0x6b   : > { %497 = vrot.lane.b32.xlu0 %v2557_v16, %s2479_s6  ;;  %611 = vrot.lane.b32.xlu1 %v2549_v12, %s2478_s30 }
  0x6f   : > { %493 = vrot.lane.b32.xlu0 %v2549_v12, %s2479_s6  ;;  %501 = vrot.lane.b32.xlu1 %v2575_v23, %s2479_s6 }
  0x73   : > { %503 = vrot.lane.b32.xlu0 %v2577_v24, %s2479_s6  ;;  %520 = vrot.lane.b32.xlu1 %v2552_v14, %s2480_s7 }
  0x77   : > { %522 = vrot.lane.b32.xlu0 %v2567_v19, %s2480_s7  ;;  %617 = vrot.lane.b32.xlu1 %v2605_v31, %s2478_s30 }
  0x7b   : > { %619 = vrot.lane.b32.xlu0 %v2575_v23, %s2478_s30  ;;  %621 = vrot.lane.b32.xlu1 %v2577_v24, %s2478_s30  ;;  %s3342_s30 = smul.u32 96, %s3518_s18 }
  0x7d   : > { %s3398_s10 = scalar_lea.vmem %s3512_s5, %s3342_s30  ;;  %s3457_s13 = scalar_lea.vmem %s3511_s4, %s3342_s30 }
  0x7f   : > { %499 = vrot.lane.b32.xlu0 %v2605_v31, %s2479_s6  ;;  %518 = vrot.lane.b32.xlu1 %v2555_v15, %s2480_s7 }
  0x83   : > { %526 = vrot.lane.b32.xlu0 %v2572_v21, %s2480_s7  ;;  %528 = vrot.lane.b32.xlu1 %v2587_v25, %s2480_s7 }
  0x87   : > { %524 = vrot.lane.b32.xlu0 %v2591_v26, %s2480_s7  ;;  %532 = vrot.lane.b32.xlu1 %v2600_v29, %s2480_s7 }
  0x89   : > { %v378_v59 = vpop.permute.xlu0 %377  ;;  %v376_v60 = vpop.permute.xlu1 %375 }
  0x8a   : > { %v394_v61 = vsel %vm393_vm2, %v376_v60, %v378_v59 }
  0x8b   : > { %534 = vrot.lane.b32.xlu0 %v2603_v30, %s2480_s7  ;;  %548 = vrot.lane.b32.xlu1 %v2611_v32, %s2482_s8  ;;  %v639_v2 = vsel %vm359_vm0, %v2605_v31, %v394_v61 }
  0x8d   : > { %v2720_v62 = vpop.permute.xlu0 %379  ;;  %v384_v63 = vpop.permute.xlu1 %383 }
  0x8e   : > { %v395_v0 = vsel %vm393_vm2, %v378_v59, %v2720_v62 }
  0x8f   : > { %550 = vrot.lane.b32.xlu0 %v2613_v33, %s2482_s8  ;;  %530 = vrot.lane.b32.xlu1 %v2621_v36, %s2480_s7  ;;  %v643_v1 = vsel %vm359_vm0, %v2575_v23, %v395_v0  ;;  %s3355_s7 = scalar_lea.vmem %s3510_s3, %s3342_s30 }
  0x90   : > { %997 = vmatprep.subr.bf16.mxu0 %v643_v1 }
  0x91   : > { %v2731_v3 = vpop.permute.xlu0 %385  ;;  %998 = vmatpush1.bf16.msra.mxu0 %v639_v2  ;;  %v382_v4 = vpop.permute.xlu1 %381 }
  0x92   : > { %v397_v5 = vsel %vm393_vm2, %v384_v63, %v2731_v3  ;;  %v396_v6 = vsel %vm393_vm2, %v382_v4, %v384_v63 }
  0x93   : > { %999 = vmatprep.subr.bf16.mxu0 %v397_v5  ;;  %546 = vrot.lane.b32.xlu0 %v2618_v35, %s2482_s8 }
  0x94   : > { %554 = vrot.lane.b32.xlu1 %v2626_v37, %s2482_s8 }
  0x95   : > { %v390_v7 = vpop.permute.xlu0 %389  ;;  %1000 = vmatpush1.bf16.msra.mxu0 %v396_v6  ;;  %v392_v9 = vpop.permute.xlu1 %391 }
  0x96   : > { %v399_v13 = vsel %vm393_vm2, %v390_v7, %v392_v9 }
  0x97   : > { %556 = vrot.lane.b32.xlu0 %v2628_v38, %s2482_s8 }
  0x98   : > { %552 = vrot.lane.b32.xlu1 %v2632_v39, %s2482_s8 }
  0x99   : > { %v415_v11 = vpop.permute.xlu0 %414  ;;  %v417_v12 = vpop.permute.xlu1 %416 }
  0x9a   : > { %v432_v14 = vsel %vm430_vm3, %v415_v11, %v417_v12  ;;  %v2753_v15 = vsel %vm649_vm4, %v392_v9, %v417_v12 }
  0x9b   : > { %560 = vrot.lane.b32.xlu0 %v2635_v40, %s2482_s8  ;;  %v656_v17 = vsel %vm649_vm4, %v399_v13, %v432_v14 }
  0x9c   : > { %562 = vrot.lane.b32.xlu1 %v2639_v41, %s2482_s8  ;;  %1001 = vmatprep.subr.bf16.mxu0 %v656_v17 }
  0x9d   : > { %v388_v18 = vpop.permute.xlu0 %387  ;;  %v413_v19 = vpop.permute.xlu1 %412 }
  0x9e   : > { %v398_v20 = vsel %vm393_vm2, %v388_v18, %v390_v7  ;;  %v431_v21 = vsel %vm430_vm3, %v413_v19, %v415_v11 }
  0x9f   : > { %576 = vrot.lane.b32.xlu0 %v2642_v42, %s2477_s29  ;;  %v652_v22 = vsel %vm649_vm4, %v398_v20, %v431_v21 }
  0xa0   : > { %578 = vrot.lane.b32.xlu1 %v2648_v43, %s2477_s29  ;;  %1002 = vmatpush1.bf16.msra.mxu0 %v652_v22 }
  0xa1   : > { %v421_v23 = vpop.permute.xlu0 %420  ;;  %v2767_v25 = vpop.permute.xlu1 %422 }
  0xa2   : > { %v434_v26 = vsel %vm430_vm3, %v421_v23, %v2767_v25 }
  0xa3   : > { %558 = vrot.lane.b32.xlu0 %v2651_v44, %s2482_s8  ;;  %1003 = vmatprep.subr.bf16.mxu0 %v434_v26 }
  0xa4   : > { %574 = vrot.lane.b32.xlu1 %v2658_v46, %s2477_s29 }
  0xa5   : > { %v419_v27 = vpop.permute.xlu0 %418  ;;  %v427_v28 = vpop.permute.xlu1 %426 }
  0xa6   : > { %v433_v29 = vsel %vm430_vm3, %v419_v27, %v421_v23 }
  0xa7   : > { %1004 = vmatpush1.bf16.msra.mxu0 %v433_v29 }
  0xa9   : > { %v429_v30 = vpop.permute.xlu0 %428  ;;  %v459_v31 = vpop.permute.xlu1 %458 }
  0xaa   : > { %v436_v34 = vsel %vm430_vm3, %v427_v28, %v429_v30 }
  0xad   : > { %v461_v32 = vpop.permute.xlu0 %460  ;;  %v425_v33 = vpop.permute.xlu1 %424 }
  0xae   : > { %v476_v35 = vsel %vm474_vm5, %v459_v31, %v461_v32  ;;  %v2779_v36 = vsel %vm440_vm1, %v429_v30, %v461_v32  ;;  %v435_v40 = vsel %vm430_vm3, %v425_v33, %v427_v28 }
  0xaf   : > { %v669_v37 = vsel %vm440_vm1, %v436_v34, %v476_v35 }
  0xb0   : > { %1005 = vmatprep.subr.bf16.mxu0 %v669_v37 }
  0xb1   : > { %v457_v38 = vpop.permute.xlu0 %456  ;;  %v583_v39 = vpop.permute.xlu1 %582 }
  0xb2   : > { %v475_v41 = vsel %vm474_vm5, %v457_v38, %v459_v31 }
  0xb3   : > { %v665_v42 = vsel %vm440_vm1, %v435_v40, %v475_v41  ;;  %v2858_v41 = vld [vmem:[%s3508_s1 + $0x68] ss:$12 sps:$4 sm:$0xff]  }
  0xb4   : > { %1006 = vmatpush1.bf16.msra.mxu0 %v665_v42 }
  0xb5   : > { %v2785_v43 = vpop.permute.xlu0 %584  ;;  %v465_v44 = vpop.permute.xlu1 %464 }
  0xb6   : > { %v2789_v45 = vsel %vm592_vm6, %v583_v39, %v2785_v43 }
  0xb7   : > { %2096 = vmatprep.subr.bf16.mxu1 %v2789_v45 }
  0xb9   : > { %v2792_v46 = vpop.permute.xlu0 %466  ;;  %v581_v47 = vpop.permute.xlu1 %580 }
  0xba   : > { %v478_v48 = vsel %vm474_vm5, %v465_v44, %v2792_v46  ;;  %v2797_v49 = vsel %vm592_vm6, %v581_v47, %v583_v39 }
  0xbb   : > { %1007 = vmatprep.subr.bf16.mxu0 %v478_v48  ;;  %2101 = vmatpush1.bf16.msra.mxu1 %v2797_v49 }
  0xbd   : > { %v463_v50 = vpop.permute.xlu0 %462  ;;  %v589_v51 = vpop.permute.xlu1 %588 }
  0xbe   : > { %v477_v52 = vsel %vm474_vm5, %v463_v50, %v465_v44 }
  0xbf   : > { %1008 = vmatpush1.bf16.msra.mxu0 %v477_v52  ;;  %v743_v52 = vld [vmem:[%s3509_s2] sm:$0xff] }
  0xc0   : > { %761 = vperm.xlu0 %2206, %v743_v52  }
  0xc1   : > { %v2801_v53 = vpop.permute.xlu0 %590  ;;  %v471_v54 = vpop.permute.xlu1 %470 }
  0xc2   : > { %v2805_v55 = vsel %vm592_vm6, %v589_v51, %v2801_v53 }
  0xc3   : > { %2097 = vmatprep.subr.bf16.mxu1 %v2805_v55 }
  0xc5   : > { %v473_v56 = vpop.permute.xlu0 %472  ;;  %v587_v57 = vpop.permute.xlu1 %586 }
  0xc6   : > { %v480_v59 = vsel %vm474_vm5, %v471_v54, %v473_v56  ;;  %v2810_v60 = vsel %vm592_vm6, %v587_v57, %v589_v51  ;;  %v744_v51 = vld [vmem:[%s3509_s2 + $0x8] sm:$0xff] }
  0xc7   : > { %1009 = vmatprep.subr.bf16.mxu0 %v480_v59  ;;  %2102 = vmatpush1.bf16.msra.mxu1 %v2810_v60  ;;  %v745_v59 = vld [vmem:[%s3509_s2 + $0x10] sm:$0xff] }
  0xc8   : > { %766 = vperm.xlu1 %2207, %v744_v51   ;;  %v757_v51 = vld [vmem:[%s3509_s2 + $0x70] sm:$0xff] }
  0xc9   : > { %v469_v61 = vpop.permute.xlu0 %468  ;;  %v608_v63 = vpop.permute.xlu1 %607 }
  0xca   : > { %v479_v0 = vsel %vm474_vm5, %v469_v61, %v471_v54  ;;  %v746_v61 = vld [vmem:[%s3509_s2 + $0x18] sm:$0xff] }
  0xcb   : > { %1010 = vmatpush1.bf16.msra.mxu0 %v479_v0  ;;  %776 = vperm.xlu0 %2206, %v746_v61   ;;  %v2230_v61 = vld [vmem:[%s3508_s1] ss:$12 sps:$4 sm:$0xff]  }
  0xcc   : > { %771 = vperm.xlu1 %2207, %v745_v59  }
  0xcd   : > { %v2814_v1 = vpop.permute.xlu0 %609  ;;  %v490_v2 = vpop.permute.xlu1 %489 }
  0xce   : > { %v2818_v4 = vsel %vm623_vm7, %v608_v63, %v2814_v1 }
  0xcf   : > { %2098 = vmatprep.subr.bf16.mxu1 %v2818_v4 }
  0xd1   : > { %v492_v5 = vpop.permute.xlu0 %491  ;;  %v606_v6 = vpop.permute.xlu1 %605 }
  0xd2   : > { %v507_v7 = vsel %vm505_vm8, %v490_v2, %v492_v5  ;;  %v2823_v9 = vsel %vm623_vm7, %v606_v6, %v608_v63  ;;  %v747_v6 = vld [vmem:[%s3509_s2 + $0x20] sm:$0xff] }
  0xd3   : > { %1011 = vmatprep.subr.bf16.mxu0 %v507_v7  ;;  %2103 = vmatpush1.bf16.msra.mxu1 %v2823_v9 }
  0xd4   : > { %781 = vperm.xlu1 %2207, %v747_v6   ;;  %v2233_v6 = vld [vmem:[%s3508_s1 + $0x1c] ss:$12 sps:$4 sm:$0xff]  }
  0xd5   : > { %v488_v11 = vpop.permute.xlu0 %487  ;;  %v614_v12 = vpop.permute.xlu1 %613 }
  0xd6   : > { %v506_v13 = vsel %vm505_vm8, %v488_v11, %v490_v2 }
  0xd7   : > { %1012 = vmatpush1.bf16.msra.mxu0 %v506_v13  ;;  %v750_v13 = vld [vmem:[%s3509_s2 + $0x38] sm:$0xff] }
  0xd9   : > { %v2827_v14 = vpop.permute.xlu0 %615  ;;  %v496_v17 = vpop.permute.xlu1 %495 }
  0xda   : > { %v2831_v18 = vsel %vm623_vm7, %v614_v12, %v2827_v14 }
  0xdb   : > { %2099 = vmatprep.subr.bf16.mxu1 %v2831_v18 }
  0xdd   : > { %v498_v19 = vpop.permute.xlu0 %497  ;;  %v612_v20 = vpop.permute.xlu1 %611 }
  0xde   : > { %v509_v21 = vsel %vm505_vm8, %v496_v17, %v498_v19  ;;  %v2836_v22 = vsel %vm623_vm7, %v612_v20, %v614_v12  ;;  %v749_v12 = vld [vmem:[%s3509_s2 + $0x30] sm:$0xff] }
  0xdf   : > { %1013 = vmatprep.subr.bf16.mxu0 %v509_v21  ;;  %2104 = vmatpush1.bf16.msra.mxu1 %v2836_v22 }
  0xe0   : > { %791 = vperm.xlu1 %2207, %v749_v12  }
  0xe1   : > { %v494_v23 = vpop.permute.xlu0 %493  ;;  %v502_v26 = vpop.permute.xlu1 %501 }
  0xe2   : > { %v508_v27 = vsel %vm505_vm8, %v494_v23, %v496_v17 }
  0xe3   : > { %1014 = vmatpush1.bf16.msra.mxu0 %v508_v27 }
  0xe5   : > { %v504_v28 = vpop.permute.xlu0 %503  ;;  %v521_v29 = vpop.permute.xlu1 %520 }
  0xe6   : > { %v511_v32 = vsel %vm505_vm8, %v502_v26, %v504_v28 }
  0xe9   : > { %v523_v30 = vpop.permute.xlu0 %522  ;;  %v618_v31 = vpop.permute.xlu1 %617 }
  0xea   : > { %v538_v33 = vsel %vm536_vm9, %v521_v29, %v523_v30  ;;  %v685_v7 = vsel %vm359_vm0, %v504_v28, %v523_v30 }
  0xeb   : > { %v681_v34 = vsel %vm359_vm0, %v511_v32, %v538_v33  ;;  %v2933_v33 = vld [vmem:[%s3508_s1 + $0xb0] ss:$12 sps:$4 sm:$0xff]  }
  0xec   : > { %1015 = vmatprep.subr.bf16.mxu0 %v681_v34 }
  0xed   : > { %v620_v35 = vpop.permute.xlu0 %619  ;;  %v2843_v37 = vpop.permute.xlu1 %621 }
  0xee   : > { %v628_v38 = vsel %vm623_vm7, %v618_v31, %v620_v35  ;;  %v2848_v39 = vsel %vm623_vm7, %v620_v35, %v2843_v37 }
  0xef   : > { %2100 = vmatprep.subr.msk.bf16.mxu1 %vm359_vm0, %v2848_v39  ;;  %v2853_v40 = vsel %vm359_vm0, %v628_v38, 0 }
  0xf0   : > { %2105 = vmatpush1.bf16.msra.mxu1 %v2853_v40 }
  0xf1   : > { %v500_v42 = vpop.permute.xlu0 %499  ;;  %1993 = vmatprep.subr.bf16.mxu1 %v473_v56  ;;  %v519_v44 = vpop.permute.xlu1 %518 }
  0xf2   : > { %v510_v47 = vsel %vm505_vm8, %v500_v42, %v502_v26  ;;  %v537_v48 = vsel %vm536_vm9, %v519_v44, %v521_v29  ;;  %v751_v26 = vld [vmem:[%s3509_s2 + $0x40] sm:$0xff]  ;;  %v754_v42 = vld [vmem:[%s3509_s2 + $0x58] sm:$0xff] }
  0xf3   : > { %v677_v50 = vsel %vm359_vm0, %v510_v47, %v537_v48  ;;  %1943 = vmatmul.mubr.msk.bf16.vlgmr.msra.gmra.mrb[0].mxu1 %vm959_vm10, %v2858_v41  ;;  %801 = vperm.xlu1 %2207, %v751_v26  }
  0xf4   : > { %1016 = vmatpush1.bf16.msra.mxu0 %v677_v50  ;;  %1994 = vmatpush3.bf16.msra.mxu1 %v2543_v8  ;;  %v2878_v8 = vld [vmem:[%s3508_s1 + $0x80] ss:$12 sps:$4 sm:$0xff]  }
  0xf5   : > { %v527_v54 = vpop.permute.xlu0 %526  ;;  %1995 = vmatprep.subr.bf16.mxu1 %v492_v5  ;;  %v529_v56 = vpop.permute.xlu1 %528  ;;  %1188 = vmatprep.mubr.bf16.mxu1 %v2481_v58  ;;  %v647_v5 = vsel %vm359_vm0, %v2577_v24, %v2720_v62  ;;  %v2904_v62 = vld [vmem:[%s3508_s1 + $0x98] ss:$12 sps:$4 sm:$0xff]   ;;  %v756_v50 = vld [vmem:[%s3509_s2 + $0x68] sm:$0xff] }
  0xf6   : > { %v540_v57 = vsel %vm536_vm9, %v527_v54, %v529_v56 }
  0xf7   : > { %1017 = vmatprep.subr.bf16.mxu0 %v540_v57  ;;  %v758_v57 = vld [vmem:[%s3509_s2 + $0x78] sm:$0xff] }
  0xf8   : > { %1996 = vmatpush3.bf16.msra.mxu1 %v2557_v16  ;;  %v748_v16 = vld [vmem:[%s3509_s2 + $0x28] sm:$0xff] }
  0xf9   : > { %v525_v63 = vpop.permute.xlu0 %524  ;;  %1997 = vmatprep.subr.bf16.mxu1 %v498_v19  ;;  %v533_v0 = vpop.permute.xlu1 %532  ;;  %786 = vperm.xlu0 %2206, %v748_v16  }
  0xfa   : > { %v539_v2 = vsel %vm536_vm9, %v525_v63, %v527_v54 }
  0xfb   : > { %1018 = vmatpush1.bf16.msra.mxu0 %v539_v2  ;;  %1944 = vmatmul.mubr.msk.bf16.gmra.mrb[4].mxu1 %vm959_vm10, %v2878_v8 }
  0xfc   : > { %1998 = vmatpush3.bf16.msra.mxu1 %v647_v5  ;;  %1198 = vmatprep.mubr.bf16.mxu1 %v2481_v58 }
  0xfd   : > { %v535_v11 = vpop.permute.xlu0 %534  ;;  %1999 = vmatprep.subr.bf16.mxu1 %v685_v7  ;;  %v549_v24 = vpop.permute.xlu1 %548  ;;  %796 = vperm.xlu0 %2206, %v750_v13   ;;  %v2256_v7 = vld [vmem:[%s3508_s1 + $0x38] ss:$12 sps:$4 sm:$0xff]  }
  0xfe   : > { %v542_v20 = vsel %vm536_vm9, %v533_v0, %v535_v11 }
 0x100   : > { %2000 = vmatpush3.bf16.msra.mxu1 %v2731_v3  ;;  %v752_v3 = vld [vmem:[%s3509_s2 + $0x48] sm:$0xff] }
 0x101   : > { %v551_v17 = vpop.permute.xlu0 %550  ;;  %2001 = vmatprep.subr.bf16.mxu1 %v529_v56  ;;  %v531_v19 = vpop.permute.xlu1 %530  ;;  %806 = vperm.xlu0 %2206, %v752_v3  }
 0x102   : > { %v566_v21 = vsel %vm564_vm11, %v549_v24, %v551_v17  ;;  %v697_v27 = vsel %vm649_vm4, %v535_v11, %v551_v17  ;;  %v541_v29 = vsel %vm536_vm9, %v531_v19, %v533_v0  ;;  %v2257_v11 = vld [vmem:[%s3508_s1 + $0x50] ss:$12 sps:$4 sm:$0xff]  }
 0x103   : > { %v693_v23 = vsel %vm649_vm4, %v542_v20, %v566_v21  ;;  %1945 = vmatmul.mubr.msk.bf16.gmra.mrb[8].mxu1 %vm959_vm10, %v2904_v62 }
 0x104   : > { %1019 = vmatprep.subr.bf16.mxu0 %v693_v23  ;;  %2002 = vmatpush3.bf16.msra.mxu1 %v2753_v15  ;;  %v753_v15 = vld [vmem:[%s3509_s2 + $0x50] sm:$0xff] }
 0x105   : > { %v547_v28 = vpop.permute.xlu0 %546  ;;  %2003 = vmatprep.subr.bf16.mxu1 %v697_v27  ;;  %1208 = vmatprep.mubr.bf16.mxu1 %v2481_v58 }
 0x106   : > { %v565_v30 = vsel %vm564_vm11, %v547_v28, %v549_v24  ;;  %v555_v31 = vpop.permute.xlu1 %554  ;;  %811 = vperm.xlu1 %2207, %v753_v15   ;;  %816 = vperm.xlu0 %2206, %v754_v42  }
 0x107   : > { %v689_v32 = vsel %vm649_vm4, %v541_v29, %v565_v30 }
 0x108   : > { %1020 = vmatpush1.bf16.msra.mxu0 %v689_v32  ;;  %2004 = vmatpush3.bf16.msra.mxu1 %v2767_v25  ;;  %v755_v25 = vld [vmem:[%s3509_s2 + $0x60] sm:$0xff] }
 0x109   : > { %v557_v34 = vpop.permute.xlu0 %556 }
 0x10a   : > { %v553_v35 = vpop.permute.xlu1 %552  ;;  %2005 = vmatprep.subr.bf16.mxu1 %v557_v34  ;;  %v568_v38 = vsel %vm564_vm11, %v555_v31, %v557_v34  ;;  %821 = vperm.xlu1 %2207, %v755_v25  }
 0x10b   : > { %1021 = vmatprep.subr.bf16.mxu0 %v568_v38  ;;  %v567_v44 = vsel %vm564_vm11, %v553_v35, %v555_v31  ;;  %1946 = vmatmul.mubr.msk.bf16.gmra.mrb[12].mxu1 %vm959_vm10, %v2933_v33 }
 0x10c   : > { %1022 = vmatpush1.bf16.msra.mxu0 %v567_v44  ;;  %2006 = vmatpush3.bf16.msra.mxu1 %v2779_v36 }
 0x10d   : > { %v561_v47 = vpop.permute.xlu0 %560  ;;  %1251 = vmatprep.mubr.bf16.mxu1 %v2743_v10  ;;  %826 = vperm.xlu0 %2206, %v756_v50  }
 0x10e   : > { %v563_v48 = vpop.permute.xlu1 %562  ;;  %831 = vperm.xlu1 %2207, %v757_v51  }
 0x10f   : > { %v570_v36 = vsel %vm564_vm11, %v561_v47, %v563_v48 }
 0x111   : > { %v577_v52 = vpop.permute.xlu0 %576  ;;  %836 = vperm.xlu0 %2206, %v758_v57  }
 0x112   : > { %v579_v54 = vpop.permute.xlu1 %578 }
 0x113   : > { %v594_v56 = vsel %vm592_vm6, %v577_v52, %v579_v54  ;;  %v709_v10 = vsel %vm440_vm1, %v563_v48, %v579_v54 }
 0x114   : > { %2007 = vmatprep.subr.bf16.mxu1 %v709_v10  ;;  %v705_v59 = vsel %vm440_vm1, %v570_v36, %v594_v56 }
 0x115   : > { %1023 = vmatprep.subr.bf16.mxu0 %v705_v59  ;;  %2008 = vmatpush3.bf16.msra.mxu1 %v2792_v46  ;;  %v559_v63 = vpop.permute.xlu0 %558  ;;  %v2235_v46 = vld [vmem:[%s3508_s1 + $0x18] ss:$12 sps:$4 sm:$0xff]  }
 0x116   : > { %v569_v0 = vsel %vm564_vm11, %v559_v63, %v561_v47  ;;  %2070 = vmatprep.subr.bf16.mxu1 %v2785_v43  ;;  %v575_v2 = vpop.permute.xlu1 %574 }
 0x117   : > { %v593_v5 = vsel %vm592_vm6, %v575_v2, %v577_v52 }
 0x118   : > { %1252 = vmatmul.mubr.bf16.vlgmr.msra.gmra.mrb[16].mxu1 %v2230_v61  ;;  %v701_v16 = vsel %vm440_vm1, %v569_v0, %v593_v5 }
 0x119   : > { %1024 = vmatpush1.bf16.msra.mxu0 %v701_v16  ;;  %2071 = vmatpush3.bf16.msra.mxu1 %v2785_v43  ;;  %v2236_v43 = vld [vmem:[%s3508_s1 + $0x34] ss:$12 sps:$4 sm:$0xff]  }
 0x11a   : > { %1106 = vmatprep.subr.bf16.mxu0 %v2789_v45  ;;  %2072 = vmatprep.subr.bf16.mxu1 %v2801_v53  ;;  %v2238_v45 = vld [vmem:[%s3508_s1 + $0x30] ss:$12 sps:$4 sm:$0xff]  }
 0x11b   : > { %1259 = vmatprep.mubr.bf16.mxu1 %v2233_v6 }
 0x11c   : > { %1026 = vmatmul.mubr.bf16.vlgmr.msra.gmra.mrb[0].mxu0 %v2230_v61 }
 0x11d   : > { %1107 = vmatpush1.bf16.msra.mxu0 %v2797_v49  ;;  %2073 = vmatpush3.bf16.msra.mxu1 %v2801_v53  ;;  %v2239_v49 = vld [vmem:[%s3508_s1 + $0x4c] ss:$12 sps:$4 sm:$0xff]   ;;  %v991_v53 = vsel %vm359_vm0, %v2843_v37, 0 }
 0x11e   : > { %1108 = vmatprep.subr.bf16.mxu0 %v2805_v55  ;;  %2074 = vmatprep.subr.bf16.mxu1 %v2814_v1  ;;  %v2241_v55 = vld [vmem:[%s3508_s1 + $0x48] ss:$12 sps:$4 sm:$0xff]  }
 0x11f   : > { %1035 = vmatprep.mubr.bf16.mxu0 %v2233_v6 }
 0x120   : > { %1260 = vmatmul.mubr.bf16.gmra.mrb[20].mxu1 %v2235_v46 }
 0x121   : > { %1109 = vmatpush1.bf16.msra.mxu0 %v2810_v60  ;;  %2075 = vmatpush3.bf16.msra.mxu1 %v2814_v1  ;;  %v2242_v60 = vld [vmem:[%s3508_s1 + $0x64] ss:$12 sps:$4 sm:$0xff]   ;;  %v2244_v1 = vld [vmem:[%s3508_s1 + $0x60] ss:$12 sps:$4 sm:$0xff]  }
 0x122   : > { %1110 = vmatprep.subr.bf16.mxu0 %v2818_v4  ;;  %2076 = vmatprep.subr.bf16.mxu1 %v2827_v14  ;;  %v2245_v4 = vld [vmem:[%s3508_s1 + $0x7c] ss:$12 sps:$4 sm:$0xff]  }
 0x123   : > { %1267 = vmatprep.mubr.bf16.mxu1 %v2236_v43 }
 0x124   : > { %1036 = vmatmul.mubr.bf16.gmra.mrb[4].mxu0 %v2235_v46 }
 0x125   : > { %1111 = vmatpush1.bf16.msra.mxu0 %v2823_v9  ;;  %2077 = vmatpush3.bf16.msra.mxu1 %v2827_v14  ;;  %v2247_v9 = vld [vmem:[%s3508_s1 + $0x78] ss:$12 sps:$4 sm:$0xff]   ;;  %v2248_v14 = vld [vmem:[%s3508_s1 + $0x94] ss:$12 sps:$4 sm:$0xff]  }
 0x126   : > { %1112 = vmatprep.subr.bf16.mxu0 %v2831_v18  ;;  %2170 = vmatprep.subr.msk.bf16.mxu1 %vm359_vm0, %v2843_v37  ;;  %v2250_v18 = vld [vmem:[%s3508_s1 + $0x90] ss:$12 sps:$4 sm:$0xff]   ;;  %v2253_v37 = vld [vmem:[%s3508_s1 + $0xa8] ss:$12 sps:$4 sm:$0xff]  }
 0x127   : > { %1045 = vmatprep.mubr.bf16.mxu0 %v2236_v43 }
 0x128   : > { %1268 = vmatmul.mubr.bf16.gmra.mrb[24].mxu1 %v2238_v45 }
 0x129   : > { %1113 = vmatpush1.bf16.msra.mxu0 %v2836_v22  ;;  %2079 = vmatpush3.bf16.msra.mxu1 %v991_v53  ;;  %v2251_v22 = vld [vmem:[%s3508_s1 + $0xac] ss:$12 sps:$4 sm:$0xff]  }
 0x12a   : > { %1938 = vmatprep.subr.msk.bf16.mxu0 %vm359_vm0, %v2848_v39  ;;  %1275 = vmatprep.mubr.bf16.mxu1 %v2239_v49  ;;  %v2254_v39 = vld [vmem:[%s3508_s1 + $0x8] ss:$12 sps:$4 sm:$0xff]  }
 0x12c   : > { %1046 = vmatmul.mubr.bf16.gmra.mrb[8].mxu0 %v2238_v45 }
 0x12d   : > { %1115 = vmatpush1.bf16.msra.mxu0 %v2853_v40  ;;  %1055 = vmatprep.mubr.bf16.mxu0 %v2239_v49  ;;  %v2255_v40 = vld [vmem:[%s3508_s1 + $0x20] ss:$12 sps:$4 sm:$0xff]  }
 0x130   : > { %1276 = vmatmul.mubr.bf16.gmra.mrb[28].mxu1 %v2241_v55 }
 0x131   : > { %1283 = vmatprep.mubr.bf16.mxu1 %v2242_v60 }
 0x134   : > { %1056 = vmatmul.mubr.bf16.gmra.mrb[12].mxu0 %v2241_v55 }
 0x135   : > { %1065 = vmatprep.mubr.bf16.mxu0 %v2242_v60 }
 0x138   : > { %1284 = vmatmul.mubr.bf16.gmra.mrb[32].mxu1 %v2244_v1 }
 0x139   : > { %1291 = vmatprep.mubr.bf16.mxu1 %v2245_v4 }
 0x13c   : > { %1066 = vmatmul.mubr.bf16.gmra.mrb[16].mxu0 %v2244_v1 }
 0x13d   : > { %1075 = vmatprep.mubr.bf16.mxu0 %v2245_v4 }
 0x13f   : > { %v3106_v47 = vpop.permute.xlu0 %761 }
 0x140   : > { %1292 = vmatmul.mubr.bf16.gmra.mrb[36].mxu1 %v2247_v9 }
 0x141   : > { %1299 = vmatprep.mubr.bf16.mxu1 %v2248_v14 }
 0x144   : > { %1076 = vmatmul.mubr.bf16.gmra.mrb[20].mxu0 %v2247_v9 }
 0x145   : > { %1085 = vmatprep.mubr.bf16.mxu0 %v2248_v14 }
 0x147   : > { %v3102_v38 = vpop.permute.xlu1 %766 }
 0x148   : > { %1300 = vmatmul.mubr.bf16.gmra.mrb[40].mxu1 %v2250_v18 }
 0x149   : > { %1307 = vmatprep.mubr.bf16.mxu1 %v2251_v22 }
 0x14a   : > { %v3112_v54 = vpop.permute.xlu0 %776 }
 0x14b   : > { %v3110_v50 = vpop.permute.xlu1 %771 }
 0x14c   : > { %1086 = vmatmul.mubr.bf16.gmra.mrb[24].mxu0 %v2250_v18 }
 0x14d   : > { %1095 = vmatprep.mubr.bf16.mxu0 %v2251_v22 }
 0x150   : > { %1308 = vmatmul.mubr.bf16.gmra.mrb[44].mxu1 %v2253_v37 }
 0x151   : > { %2080 = vmatprep.mubr.msk.bf16.mxu1 %vm959_vm10, %v2254_v39 }
 0x153   : > { %v3118_v59 = vpop.permute.xlu1 %781 }
 0x154   : > { %1096 = vmatmul.mubr.bf16.gmra.mrb[28].mxu0 %v2253_v37 }
 0x155   : > { %1138 = vmatprep.mubr.bf16.mxu0 %v2481_v58 }
 0x158   : > { %2081 = vmatmul.mubr.msk.bf16.vlgmr.msra.gmra.mrb[48].mxu1 %vm959_vm10, %v2255_v40 }
 0x159   : > { %2084 = vmatprep.mubr.msk.bf16.mxu1 %vm959_vm10, %v2256_v7 }
 0x15c   : > { %1939 = vmatmul.mubr.msk.bf16.vlgmr.msra.gmra.mrb[0].mxu0 %vm959_vm10, %v2254_v39 }
 0x15d   : > { %1148 = vmatprep.mubr.bf16.mxu0 %v2481_v58 }
 0x15f   : > { %v3124_v16 = vpop.permute.xlu1 %791 }
 0x160   : > { %2085 = vmatmul.mubr.msk.bf16.gmra.mrb[52].mxu1 %vm959_vm10, %v2257_v11 }
 0x161   : > { %2088 = vmatprep.mubr.msk.bf16.mxu1 %vm959_vm10, %v2858_v41 }
 0x164   : > { %1940 = vmatmul.mubr.msk.bf16.gmra.mrb[4].mxu0 %vm959_vm10, %v2255_v40 }
 0x165   : > { %1158 = vmatprep.mubr.bf16.mxu0 %v2481_v58 }
 0x168   : > { %2089 = vmatmul.mubr.msk.bf16.gmra.mrb[56].mxu1 %vm959_vm10, %v2878_v8 }
 0x169   : > { %2092 = vmatprep.mubr.msk.bf16.mxu1 %vm959_vm10, %v2904_v62 }
 0x16c   : > { %1941 = vmatmul.mubr.msk.bf16.gmra.mrb[8].mxu0 %vm959_vm10, %v2256_v7 }
 0x16d   : > { %1168 = vmatprep.mubr.bf16.mxu0 %v2481_v58 }
 0x170   : > { %2093 = vmatmul.mubr.msk.bf16.gmra.mrb[60].mxu1 %vm959_vm10, %v2933_v33 }
 0x172   : > { %v3130_v53 = vpop.permute.xlu1 %801 }
 0x174   : > { %1942 = vmatmul.mubr.msk.bf16.gmra.mrb[12].mxu0 %vm959_vm10, %v2257_v11 }
 0x178   : > { %v3120_v61 = vpop.permute.xlu0 %786 }
 0x17c   : > { %v3128_v43 = vpop.permute.xlu0 %796 }
 0x180   : > { %v3134_v9 = vpop.permute.xlu0 %806 }
 0x1c6   : > { %v1180_v41 = vpop.f32.mrb[0].mxu1 }
 0x1c7   : > { %v3068_v24 = vpop.f32.mrb[1].mxu1 }
 0x1c8   : > { %v3070_v12 = vpop.f32.mrb[2].mxu1 }
 0x1c9   : > { %v3072_v13 = vpop.f32.mrb[3].mxu1 }
 0x1ce   : > { %v3074_v8 = vpop.f32.mrb[4].mxu1 }
 0x1cf   : > { %v3076_v17 = vpop.f32.mrb[5].mxu1 }
 0x1d0   : > { %v3078_v62 = vpop.f32.mrb[6].mxu1 }
 0x1d1   : > { %v3080_v19 = vpop.f32.mrb[7].mxu1 }
 0x1d6   : > { %v3082_v58 = vpop.f32.mrb[8].mxu1 }
 0x1d7   : > { %v3084_v20 = vpop.f32.mrb[9].mxu1 }
 0x1d8   : > { %v3086_v21 = vpop.f32.mrb[10].mxu1 }
 0x1d9   : > { %v3088_v23 = vpop.f32.mrb[11].mxu1 }
 0x1de   : > { %v3090_v26 = vpop.f32.mrb[12].mxu1 }
 0x1df   : > { %v3092_v3 = vpop.f32.mrb[13].mxu1 }
 0x1e0   : > { %v3094_v27 = vpop.f32.mrb[14].mxu1 }
 0x1e1   : > { %v3096_v28 = vpop.f32.mrb[15].mxu1 }
 0x1eb   : > { %v2009_v29 = vpop.f32.mrb[16].mxu1 }
 0x1ec   : > { %v2010_v30 = vpop.f32.mrb[17].mxu1 }
 0x1ed   : > { %v3098_v31 = vadd.f32 %v2010_v30, %v2009_v29  ;;  %v2012_v32 = vpop.f32.mrb[18].mxu1 }
 0x1ee   : > { %v2013_v33 = vpop.f32.mrb[19].mxu1 }
 0x1ef   : > { %v3100_v15 = vadd.f32 %v2013_v33, %v2012_v32 }
 0x1f3   : > { %v2015_v34 = vpop.f32.mrb[20].mxu1 }
 0x1f4   : > { %v2016_v35 = vpop.f32.mrb[21].mxu1 }
 0x1f5   : > { %v3104_v42 = vadd.f32 %v2016_v35, %v2015_v34  ;;  %v2018_v44 = vpop.f32.mrb[22].mxu1 }
 0x1f6   : > { %v2019_v25 = vpop.f32.mrb[23].mxu1 }
 0x1f7   : > { %v3108_v48 = vadd.f32 %v2019_v25, %v2018_v44  ;;  %v3151_v44 = vpop.permute.xlu1 %811 }
 0x1fb   : > { %v2021_v51 = vpop.f32.mrb[24].mxu1 }
 0x1fc   : > { %v2022_v52 = vpop.f32.mrb[25].mxu1 }
 0x1fd   : > { %v3114_v36 = vadd.f32 %v2022_v52, %v2021_v51  ;;  %v2024_v56 = vpop.f32.mrb[26].mxu1 }
 0x1fe   : > { %v2025_v10 = vpop.f32.mrb[27].mxu1 }
 0x1ff   : > { %v3116_v57 = vadd.f32 %v2025_v10, %v2024_v56  ;;  %v3155_v56 = vpop.permute.xlu0 %816 }
 0x203   : > { %v2027_v63 = vpop.f32.mrb[28].mxu1 }
 0x204   : > { %v2028_v0 = vpop.f32.mrb[29].mxu1 }
 0x205   : > { %v3122_v2 = vadd.f32 %v2028_v0, %v2027_v63  ;;  %v2030_v5 = vpop.f32.mrb[30].mxu1 }
 0x206   : > { %v2031_v6 = vpop.f32.mrb[31].mxu1 }
 0x207   : > { %v3126_v46 = vadd.f32 %v2031_v6, %v2030_v5 }
 0x20b   : > { %v2033_v45 = vpop.f32.mrb[32].mxu1 }
 0x20c   : > { %v2034_v49 = vpop.f32.mrb[33].mxu1 }
 0x20d   : > { %v3132_v55 = vadd.f32 %v2034_v49, %v2033_v45  ;;  %v2036_v60 = vpop.f32.mrb[34].mxu1 }
 0x20e   : > { %v2037_v1 = vpop.f32.mrb[35].mxu1 }
 0x20f   : > { %v1067_v4 = vpop.f32.mrb[16].mxu0  ;;  %v3136_v14 = vadd.f32 %v2037_v1, %v2036_v60 }
 0x210   : > { %v1068_v18 = vadd.f32 %v1067_v4, %v3130_v53  ;;  %v1069_v22 = vpop.f32.mrb[17].mxu0 }
 0x211   : > { %v1070_v37 = vadd.f32 %v1069_v22, %v3130_v53  ;;  %v1071_v39 = vpop.f32.mrb[18].mxu0  ;;  %v3175_v22 = vpop.permute.xlu1 %821 }
 0x212   : > { %v1181_v40 = vadd.f32 %v1180_v41, %v1068_v18  ;;  %v1072_v7 = vadd.f32 %v1071_v39, %v3134_v9  ;;  %v1073_v11 = vpop.f32.mrb[19].mxu0 }
 0x213   : > { %v3142_v29 = vadd.f32 %v3068_v24, %v1070_v37  ;;  %v1074_v30 = vadd.f32 %v1073_v11, %v3134_v9  ;;  %v2039_v32 = vpop.f32.mrb[36].mxu1  ;;  %v3179_v11 = vpop.permute.xlu0 %826 }
 0x214   : > { %v3146_v33 = vadd.f32 %v3070_v12, %v1072_v7  ;;  %v2040_v34 = vpop.f32.mrb[37].mxu1  ;;  %2258 = vtanh.f32 %v1181_v40 }
 0x215   : > { %v3149_v35 = vadd.f32 %v3072_v13, %v1074_v30  ;;  %v3153_v25 = vadd.f32 %v2040_v34, %v2039_v32  ;;  %v2042_v41 = vpop.f32.mrb[38].mxu1  ;;  %2260 = vtanh.f32 %v3142_v29 }
 0x216   : > { %v2043_v51 = vpop.f32.mrb[39].mxu1  ;;  %2262 = vtanh.f32 %v3146_v33 }
 0x217   : > { %v1077_v52 = vpop.f32.mrb[20].mxu0  ;;  %v3157_v24 = vadd.f32 %v2043_v51, %v2042_v41 }
 0x218   : > { %v1078_v10 = vadd.f32 %v1077_v52, %v3151_v44  ;;  %v1079_v63 = vpop.f32.mrb[21].mxu0 }
 0x219   : > { %v1080_v12 = vadd.f32 %v1079_v63, %v3151_v44  ;;  %v1081_v0 = vpop.f32.mrb[22].mxu0 }
 0x21a   : > { %v3162_v13 = vadd.f32 %v3074_v8, %v1078_v10  ;;  %v1082_v5 = vadd.f32 %v1081_v0, %v3155_v56  ;;  %v1083_v6 = vpop.f32.mrb[23].mxu0 }
 0x21b   : > { %v3166_v45 = vadd.f32 %v3076_v17, %v1080_v12  ;;  %v1084_v49 = vadd.f32 %v1083_v6, %v3155_v56  ;;  %v2045_v60 = vpop.f32.mrb[40].mxu1  ;;  %v3191_v6 = vpop.permute.xlu1 %831 }
 0x21c   : > { %v3170_v1 = vadd.f32 %v3078_v62, %v1082_v5  ;;  %v2046_v4 = vpop.f32.mrb[41].mxu1 }
 0x21d   : > { %v3173_v18 = vadd.f32 %v3080_v19, %v1084_v49  ;;  %v3177_v8 = vadd.f32 %v2046_v4, %v2045_v60  ;;  %v2048_v37 = vpop.f32.mrb[42].mxu1 }
 0x21e   : > { %v2049_v39 = vpop.f32.mrb[43].mxu1 }
 0x21f   : > { %v1087_v7 = vpop.f32.mrb[24].mxu0  ;;  %v3181_v17 = vadd.f32 %v2049_v39, %v2048_v37  ;;  %v3195_v37 = vpop.permute.xlu0 %836 }
 0x220   : > { %v1088_v30 = vadd.f32 %v1087_v7, %v3175_v22  ;;  %v1089_v32 = vpop.f32.mrb[25].mxu0 }
 0x221   : > { %v1090_v62 = vadd.f32 %v1089_v32, %v3175_v22  ;;  %v1091_v34 = vpop.f32.mrb[26].mxu0 }
 0x222   : > { %v1201_v19 = vadd.f32 %v3082_v58, %v1088_v30  ;;  %v1092_v41 = vadd.f32 %v1091_v34, %v3179_v11  ;;  %v1093_v51 = vpop.f32.mrb[27].mxu0 }
 0x223   : > { %v1203_v52 = vadd.f32 %v3084_v20, %v1090_v62  ;;  %v1094_v10 = vadd.f32 %v1093_v51, %v3179_v11  ;;  %v2051_v63 = vpop.f32.mrb[44].mxu1 }
 0x224   : > { %v1205_v12 = vadd.f32 %v3086_v21, %v1092_v41  ;;  %v2052_v0 = vpop.f32.mrb[45].mxu1  ;;  %v1979_v30 = vmul.f32 -1.442695, %v1201_v19  ;;  %v1262_v41 = vadd.f32 %v3104_v42, %v3110_v50  ;;  %v1254_v19 = vadd.f32 %v3098_v31, %v3106_v47 }
 0x225   : > { %v1207_v5 = vadd.f32 %v3088_v23, %v1094_v10  ;;  %v3193_v49 = vadd.f32 %v2052_v0, %v2051_v63  ;;  %v2054_v60 = vpop.f32.mrb[46].mxu1 }
 0x226   : > { %v2055_v4 = vpop.f32.mrb[47].mxu1  ;;  %2264 = vpow2.f32 %v1979_v30 }
 0x227   : > { %v1097_v58 = vpop.f32.mrb[28].mxu0  ;;  %v3197_v39 = vadd.f32 %v2055_v4, %v2054_v60  ;;  %v1265_v60 = vadd.f32 %v3108_v48, %v3112_v54  ;;  %v1257_v4 = vadd.f32 %v3100_v15, %v3102_v38  ;;  %2266 = vtanh.f32 %v3149_v35 }
 0x228   : > { %v1098_v20 = vadd.f32 %v1097_v58, %v3191_v6  ;;  %v1099_v7 = vpop.f32.mrb[29].mxu0  ;;  %2268 = vtanh.f32 %v3162_v13  ;;  %v1980_v48 = vmul.f32 -1.442695, %v1203_v52  ;;  %v3229_v52 = vpop.eup %2258 }
 0x229   : > { %v1100_v21 = vadd.f32 %v1099_v7, %v3191_v6  ;;  %v1101_v32 = vpop.f32.mrb[30].mxu0  ;;  %2270 = vtanh.f32 %v3166_v45  ;;  %v1270_v45 = vadd.f32 %v3114_v36, %v3118_v59 }
 0x22a   : > { %v1211_v23 = vadd.f32 %v3090_v26, %v1098_v20  ;;  %v1102_v62 = vadd.f32 %v1101_v32, %v3195_v37  ;;  %v1103_v34 = vpop.f32.mrb[31].mxu0  ;;  %2272 = vtanh.f32 %v3170_v1  ;;  %v1278_v32 = vadd.f32 %v3122_v2, %v3124_v16 }
 0x22b   : > { %v1213_v51 = vadd.f32 %v3092_v3, %v1100_v21  ;;  %v1104_v10 = vadd.f32 %v1103_v34, %v3195_v37  ;;  %v2082_v63 = vpop.f32.mrb[48].mxu1  ;;  %v1983_v21 = vmul.f32 -1.442695, %v1207_v5  ;;  %v1281_v34 = vadd.f32 %v3126_v46, %v3128_v43 }
 0x22c   : > { %v1215_v26 = vadd.f32 %v3094_v27, %v1102_v62  ;;  %v1359_v40 = vadd.f32 %v2082_v63, %v1262_v41  ;;  %v1350_v0 = vpop.f32.mrb[49].mxu1  ;;  %v3233_v41 = vpop.eup %2260  ;;  %v1273_v63 = vadd.f32 %v3116_v57, %v3120_v61 }
 0x22d   : > { %v3215_v42 = vadd.f32 %v3096_v28, %v1104_v10  ;;  %v1351_v3 = vadd.f32 %v1350_v0, %v1254_v19  ;;  %v2083_v29 = vpop.f32.mrb[50].mxu1  ;;  %v1982_v28 = vmul.f32 -1.442695, %v1205_v12  ;;  %v3239_v36 = vpop.eup %2262 }
 0x22e   : > { %v1963_v31 = vmul.f32 -1.442695, %v1359_v40  ;;  %v1362_v33 = vadd.f32 %v2083_v29, %v1265_v60  ;;  %v1353_v58 = vpop.f32.mrb[51].mxu1 }
 0x22f   : > { %v1354_v27 = vadd.f32 %v1353_v58, %v1257_v4  ;;  %v1140_v20 = vpop.f32.mrb[0].mxu0  ;;  %v1957_v13 = vmul.f32 -1.442695, %v1351_v3  ;;  %v1985_v3 = vmul.f32 -1.442695, %v1211_v23 }
 0x230   : > { %v1142_v7 = vpop.f32.mrb[1].mxu0  ;;  %2274 = vpow2.f32 %v1963_v31  ;;  %v2106_v15 = vadd.f32 %v1140_v20, %v3106_v47  ;;  %v1966_v1 = vmul.f32 -1.442695, %v1362_v33  ;;  %v2265_v60 = vpop.eup %2264  ;;  %v1986_v31 = vmul.f32 -1.442695, %v1213_v51 }
 0x231   : > { %v1144_v30 = vpop.f32.mrb[2].mxu0  ;;  %2276 = vtanh.f32 %v3173_v18  ;;  %v1960_v2 = vmul.f32 -1.442695, %v1354_v27  ;;  %v3245_v4 = vpop.eup %2266  ;;  %v2107_v33 = vadd.f32 %v1142_v7, %v3106_v47  ;;  %v1988_v27 = vmul.f32 -1.442695, %v1215_v26 }
 0x232   : > { %v1146_v35 = vpop.f32.mrb[3].mxu0  ;;  %2278 = vpow2.f32 %v1980_v48  ;;  %v1955_v19 = vmul.f32 -1.442695, %v2106_v15  ;;  %v3248_v58 = vpop.eup %2268  ;;  %v2108_v20 = vadd.f32 %v1144_v30, %v3102_v38  ;;  %v1294_v47 = vadd.f32 %v3153_v25, %v3151_v44 }
 0x233   : > { %v2086_v62 = vpop.f32.mrb[52].mxu1  ;;  %2280 = vpow2.f32 %v1982_v28  ;;  %v3253_v23 = vpop.eup %2270  ;;  %v1605_v28 = vadd.f32 1.0, %v2265_v60  ;;  %v1286_v7 = vadd.f32 %v3132_v55, %v3130_v53  ;;  %v1289_v30 = vadd.f32 %v3136_v14, %v3134_v9 }
 0x234   : > { %v1375_v12 = vadd.f32 %v2086_v62, %v1278_v32  ;;  %v1366_v5 = vpop.f32.mrb[53].mxu1  ;;  %2282 = vpow2.f32 %v1983_v21  ;;  %v2109_v21 = vadd.f32 %v1146_v35, %v3102_v38  ;;  %v3260_v51 = vpop.eup %2272  ;;  %v1297_v35 = vadd.f32 %v3157_v24, %v3155_v56 }
 0x235   : > { %v3235_v10 = vadd.f32 %v1366_v5, %v1270_v45  ;;  %v2087_v18 = vpop.f32.mrb[54].mxu1  ;;  %2284 = vpow2.f32 %v1957_v13  ;;  %v1956_v13 = vmul.f32 -1.442695, %v2107_v33  ;;  %v1958_v45 = vmul.f32 -1.442695, %v2108_v20 }
 0x236   : > { %v3241_v40 = vadd.f32 %v2087_v18, %v1281_v34  ;;  %v1369_v0 = vpop.f32.mrb[55].mxu1  ;;  %2286 = vpow2.f32 %v1966_v1  ;;  %v1959_v9 = vmul.f32 -1.442695, %v2109_v21  ;;  %v1302_v60 = vadd.f32 %v3177_v8, %v3175_v22 }
 0x237   : > { %v3243_v46 = vadd.f32 %v1369_v0, %v1273_v63  ;;  %v1150_v29 = vpop.f32.mrb[4].mxu0  ;;  %2288 = vpow2.f32 %v1960_v2  ;;  %v1975_v2 = vmul.f32 -1.442695, %v1375_v12  ;;  %v1313_v20 = vadd.f32 %v3197_v39, %v3195_v37 }
 0x238   : > { %v1152_v57 = vpop.f32.mrb[5].mxu0  ;;  %2290 = vpow2.f32 %v1955_v19  ;;  %v2110_v22 = vadd.f32 %v1150_v29, %v3110_v50  ;;  %v1978_v37 = vmul.f32 -1.442695, %v3241_v40 }
 0x239   : > { %v3251_v48 = vpop.f32.mrb[6].mxu0  ;;  %2292 = vpow2.f32 %v1985_v3  ;;  %v1305_v3 = vadd.f32 %v3181_v17, %v3179_v11  ;;  %v1972_v29 = vmul.f32 -1.442695, %v3243_v46 }
 0x23a   : > { %v3256_v15 = vpop.f32.mrb[7].mxu0  ;;  %v2275_v32 = vpop.eup %2274  ;;  %2294 = vpow2.f32 %v1986_v31  ;;  %v2112_v46 = vadd.f32 %v3251_v48, %v3112_v54 }
 0x23b   : > { %v2090_v26 = vpop.f32.mrb[56].mxu1  ;;  %v3270_v44 = vpop.eup %2276  ;;  %2296 = vpow2.f32 %v1988_v27  ;;  %v1457_v25 = vadd.f32 1.0, %v2275_v32  ;;  %v1310_v27 = vadd.f32 %v3193_v49, %v3191_v6 }
 0x23c   : > { %v3266_v62 = vadd.f32 %v2090_v26, %v1294_v47  ;;  %v1382_v38 = vpop.f32.mrb[57].mxu1  ;;  %v3274_v55 = vpop.eup %2278  ;;  %2298 = vrcp.f32 %v1605_v28  ;;  %v1969_v47 = vmul.f32 -1.442695, %v3235_v10  ;;  %v2111_v26 = vadd.f32 %v1152_v57, %v3110_v50 }
 0x23d   : > { %v3272_v1 = vadd.f32 %v1382_v38, %v1286_v7  ;;  %v2091_v53 = vpop.f32.mrb[58].mxu1  ;;  %v3278_v34 = vpop.eup %2280  ;;  %2300 = vrcp.f32 %v1457_v25  ;;  %v1961_v38 = vmul.f32 -1.442695, %v2110_v22  ;;  %v1964_v48 = vmul.f32 -1.442695, %v2112_v46 }
 0x23e   : > { %v3276_v14 = vadd.f32 %v2091_v53, %v1297_v35  ;;  %v1385_v5 = vpop.f32.mrb[59].mxu1  ;;  %v3284_v18 = vpop.eup %2282  ;;  %2302 = vpow2.f32 %v1956_v13 }
 0x23f   : > { %v3280_v56 = vadd.f32 %v1385_v5, %v1289_v30  ;;  %v3282_v24 = vpop.f32.mrb[8].mxu0  ;;  %v2285_v19 = vpop.eup %2284  ;;  %2304 = vpow2.f32 %v1958_v45  ;;  %v1962_v45 = vmul.f32 -1.442695, %v2111_v26 }
 0x240   : > { %v3286_v63 = vpop.f32.mrb[9].mxu0  ;;  %v2287_v12 = vpop.eup %2286  ;;  %v1451_v31 = vadd.f32 1.0, %v2285_v19  ;;  %2306 = vpow2.f32 %v1959_v9  ;;  %v2113_v19 = vadd.f32 %v3256_v15, %v3112_v54 }
 0x241   : > { %v3288_v0 = vpop.f32.mrb[10].mxu0  ;;  %v2289_v28 = vpop.eup %2288  ;;  %v1460_v21 = vadd.f32 1.0, %v2287_v12  ;;  %2308 = vpow2.f32 %v1975_v2 }
 0x242   : > { %v3294_v33 = vpop.f32.mrb[11].mxu0  ;;  %v2291_v11 = vpop.eup %2290  ;;  %2310 = vrcp.f32 %v1451_v31  ;;  %v1454_v17 = vadd.f32 1.0, %v2289_v28  ;;  %v1965_v22 = vmul.f32 -1.442695, %v2113_v19 }
 0x243   : > { %v2094_v8 = vpop.f32.mrb[60].mxu1  ;;  %v3305_v6 = vpop.eup %2292  ;;  %2312 = vrcp.f32 %v1460_v21  ;;  %v1449_v49 = vadd.f32 1.0, %v2291_v11 }
 0x244   : > { %v3303_v7 = vadd.f32 %v2094_v8, %v1310_v27  ;;  %v1398_v30 = vpop.f32.mrb[61].mxu1  ;;  %v3310_v32 = vpop.eup %2294  ;;  %2314 = vrcp.f32 %v1454_v17 }
 0x245   : > { %v3308_v39 = vadd.f32 %v1398_v30, %v1302_v60  ;;  %v2095_v10 = vpop.f32.mrb[62].mxu1  ;;  %v3315_v57 = vpop.eup %2296  ;;  %2316 = vrcp.f32 %v1449_v49 }
 0x246   : > { %v3313_v13 = vadd.f32 %v2095_v10, %v1313_v20  ;;  %v1401_v50 = vpop.f32.mrb[63].mxu1  ;;  %v3321_v40 = vpop.eup %2298  ;;  %2318 = vpow2.f32 %v1969_v47  ;;  %v2114_v10 = vadd.f32 %v3282_v24, %v3118_v59 }
 0x247   : > { %v3317_v35 = vadd.f32 %v1401_v50, %v1305_v3  ;;  %v3319_v25 = vpop.f32.mrb[12].mxu0  ;;  %v3325_v9 = vpop.eup %2300  ;;  %2320 = vpow2.f32 %v1978_v37  ;;  %v2115_v50 = vadd.f32 %v3286_v63, %v3118_v59 }
 0x248   : > { %v3323_v53 = vpop.f32.mrb[13].mxu0  ;;  %v2303_v2 = vpop.eup %2302  ;;  %2322 = vpow2.f32 %v1972_v29  ;;  %v1967_v19 = vmul.f32 -1.442695, %v2114_v10 }
 0x249   : > { %v3329_v5 = vpop.f32.mrb[14].mxu0  ;;  %v2305_v3 = vpop.eup %2304  ;;  %v1450_v12 = vadd.f32 1.0, %v2303_v2  ;;  %2324 = vpow2.f32 %v1961_v38  ;;  %v1649_v2 = vld [vmem:[%s3355_s7 + $0x40] sm:$0xff]  ;;  %v1968_v63 = vmul.f32 -1.442695, %v2115_v50  ;;  %v3403_v50 = vld [vmem:[%s3355_s7 + $0x38] sm:$0xff] }
 0x24a   : > { %v3333_v60 = vpop.f32.mrb[15].mxu0  ;;  %v2307_v31 = vpop.eup %2306  ;;  %v1452_v27 = vadd.f32 1.0, %v2305_v3  ;;  %2326 = vpow2.f32 %v1962_v45  ;;  %v2116_v3 = vadd.f32 %v3288_v0, %v3120_v61 }
 0x24b   : > { %v2309_v20 = vpop.eup %2308  ;;  %2328 = vrcp.f32 %v1450_v12  ;;  %v1453_v28 = vadd.f32 1.0, %v2307_v31  ;;  %v2117_v31 = vadd.f32 %v3294_v33, %v3120_v61 }
 0x24c   : > { %v3335_v21 = vpop.eup %2310  ;;  %2330 = vrcp.f32 %v1452_v27  ;;  %v1529_v47 = vadd.f32 1.0, %v2309_v20  ;;  %v1970_v61 = vmul.f32 -1.442695, %v2116_v3 }
 0x24d   : > { %v3337_v8 = vpop.eup %2312  ;;  %2332 = vrcp.f32 %v1453_v28  ;;  %v1643_v28 = vld [vmem:[%s3355_s7 + $0x10] sm:$0xff] }
 0x24e   : > { %v3339_v54 = vpop.eup %2314  ;;  %2334 = vrcp.f32 %v1529_v47 }
 0x24f   : > { %v2317_v15 = vpop.eup %2316  ;;  %2336 = vpow2.f32 %v1964_v48  ;;  %v1652_v48 = vld [vmem:[%s3355_s7 + $0x58] sm:$0xff] }
 0x250   : > { %v2319_v11 = vpop.eup %2318  ;;  %v3345_v17 = vmul.f32 %v2317_v15, %v3229_v52  ;;  %2338 = vpow2.f32 %v1965_v22  ;;  %v3379_v15 = vld [vmem:[%s3355_s7] sm:$0xff] }
 0x251   : > { %v2321_v26 = vpop.eup %2320  ;;  %v1523_v30 = vadd.f32 1.0, %v2319_v11  ;;  %2340 = vtanh.f32 %v3266_v62 }
 0x252   : > { %v2323_v49 = vpop.eup %2322  ;;  %v1532_v37 = vadd.f32 1.0, %v2321_v26  ;;  %2342 = vtanh.f32 %v3272_v1 }
 0x253   : > { %v2325_v29 = vpop.eup %2324  ;;  %2344 = vrcp.f32 %v1523_v30  ;;  %v1526_v52 = vadd.f32 1.0, %v2323_v49  ;;  %v3386_v30 = vld [vmem:[%s3355_s7 + $0x18] sm:$0xff]  ;;  %v3389_v49 = vld [vmem:[%s3355_s7 + $0x20] sm:$0xff] }
 0x254   : > { %v2327_v62 = vpop.eup %2326  ;;  %2346 = vrcp.f32 %v1532_v37  ;;  %v1455_v38 = vadd.f32 1.0, %v2325_v29  ;;  %v3392_v37 = vld [vmem:[%s3355_s7 + $0x30] sm:$0xff] }
 0x255   : > { %v2329_v45 = vpop.eup %2328  ;;  %2348 = vrcp.f32 %v1526_v52  ;;  %v1456_v1 = vadd.f32 1.0, %v2327_v62  ;;  %v1987_v52 = vmul.f32 -1.442695, %v3303_v7  ;;  %v3409_v62 = vld [vmem:[%s3355_s7 + $0x50] sm:$0xff]  ;;  %v1981_v7 = vmul.f32 -1.442695, %v3308_v39 }
 0x256   : > { %v2331_v46 = vpop.eup %2330  ;;  %v3360_v24 = vmul.f32 %v2329_v45, %v3233_v41  ;;  %2350 = vrcp.f32 %v1455_v38 }
 0x257   : > { %v2333_v12 = vpop.eup %2332  ;;  %v3366_v59 = vmul.f32 %v2331_v46, %v3239_v36  ;;  %2352 = vrcp.f32 %v1456_v1  ;;  %v2118_v46 = vadd.f32 %v3319_v25, %v3124_v16  ;;  %v1984_v25 = vmul.f32 -1.442695, %v3317_v35 }
 0x258   : > { %v2335_v41 = vpop.eup %2334  ;;  %v3371_v27 = vmul.f32 %v2333_v12, %v3245_v4  ;;  %2354 = vtanh.f32 %v3276_v14  ;;  %v1646_v4 = vld [vmem:[%s3355_s7 + $0x28] sm:$0xff] }
 0x259   : > { %v2337_v20 = vpop.eup %2336  ;;  %v1661_v0 = vmul.f32 %v2335_v41, %v1649_v2  ;;  %2356 = vtanh.f32 %v3280_v56  ;;  %v3382_v14 = vld [vmem:[%s3355_s7 + $0x8] sm:$0xff]  ;;  %v1971_v56 = vmul.f32 -1.442695, %v2117_v31  ;;  %v1973_v39 = vmul.f32 -1.442695, %v2118_v46 }
 0x25a   : > { %v2339_v36 = vpop.eup %2338  ;;  %v1458_v47 = vadd.f32 1.0, %v2337_v20  ;;  %2358 = vpow2.f32 %v1967_v19 }
 0x25b   : > { %v2341_v33 = vpop.eup %2340  ;;  %v1459_v22 = vadd.f32 1.0, %v2339_v36  ;;  %2360 = vpow2.f32 %v1968_v63  ;;  %v1990_v63 = vmul.f32 -1.442695, %v3313_v13 }
 0x25c   : > { %v2343_v11 = vpop.eup %2342  ;;  %2362 = vrcp.f32 %v1458_v47  ;;  %v1673_v26 = vmul.f32 %v2341_v33, %v3325_v9  ;;  %v3406_v9 = vld [vmem:[%s3355_s7 + $0x48] sm:$0xff] }
 0x25d   : > { %v2345_v10 = vpop.eup %2344  ;;  %2364 = vrcp.f32 %v1459_v22  ;;  %v1667_v29 = vmul.f32 %v2343_v11, %v3335_v21 }
 0x25e   : > { %v2347_v38 = vpop.eup %2346  ;;  %v1655_v45 = vmul.f32 %v2345_v10, %v1643_v28  ;;  %v1685_v1 = vadd.f32 %v1673_v26, %v1661_v0  ;;  %2366 = vpow2.f32 %v1970_v61 }
 0x25f   : > { %v2349_v2 = vpop.eup %2348  ;;  %v1664_v19 = vmul.f32 %v2347_v38, %v1652_v48  ;;  %2368 = vpow2.f32 %v1971_v56 }
 0x260   : > { %v2351_v21 = vpop.eup %2350  ;;  %v1658_v3 = vmul.f32 %v2349_v2, %v1646_v4  ;;  %2370 = vtanh.f32 %v1685_v1  ;;  %v1679_v12 = vadd.f32 %v1667_v29, %v1655_v45  ;;  %1734 = vst.msk [vmem:[%s3398_s10 + $0x40] sm:$0xff] %vm1715_vm12, %v1685_v1 }
 0x261   : > { %v2353_v31 = vpop.eup %2352  ;;  %v3418_v41 = vmul.f32 %v2351_v21, %v3248_v58  ;;  %2372 = vpow2.f32 %v1987_v52 }
 0x262   : > { %v2355_v20 = vpop.eup %2354  ;;  %v3422_v0 = vmul.f32 %v2353_v31, %v3253_v23  ;;  %2374 = vtanh.f32 %v1679_v12  ;;  %1728 = vst.msk [vmem:[%s3398_s10 + $0x10] sm:$0xff] %vm1715_vm12, %v1679_v12  ;;  %v2119_v23 = vadd.f32 %v3323_v53, %v3124_v16 }
 0x263   : > { %v2357_v36 = vpop.eup %2356  ;;  %v1676_v13 = vmul.f32 %v2355_v20, %v3337_v8  ;;  %2376 = vpow2.f32 %v1981_v7  ;;  %v1609_v20 = vadd.f32 1.0, %v3284_v18 }
 0x264   : > { %v2359_v28 = vpop.eup %2358  ;;  %v1670_v58 = vmul.f32 %v2357_v36, %v3339_v54  ;;  %2378 = vpow2.f32 %v1990_v63  ;;  %v2120_v54 = vadd.f32 %v3329_v5, %v3128_v43  ;;  %v1974_v26 = vmul.f32 -1.442695, %v2119_v23 }
 0x265   : > { %v2361_v48 = vpop.eup %2360  ;;  %v1688_v47 = vadd.f32 %v1676_v13, %v1664_v19  ;;  %v1521_v35 = vadd.f32 1.0, %v2359_v28  ;;  %2380 = vpow2.f32 %v1984_v25  ;;  %v1606_v63 = vadd.f32 1.0, %v3274_v55 }
 0x266   : > { %v2363_v61 = vpop.eup %2362  ;;  %v1682_v33 = vadd.f32 %v1670_v58, %v1658_v3  ;;  %v1522_v4 = vadd.f32 1.0, %v2361_v48  ;;  %2382 = vpow2.f32 %v1973_v39  ;;  %v1976_v52 = vmul.f32 -1.442695, %v2120_v54 }
 0x267   : > { %v2365_v22 = vpop.eup %2364  ;;  %v3431_v8 = vmul.f32 %v2363_v61, %v3260_v51  ;;  %2384 = vtanh.f32 %v1688_v47  ;;  %1737 = vst.msk [vmem:[%s3398_s10 + $0x58] sm:$0xff] %vm1715_vm12, %v1688_v47  ;;  %v1989_v23 = vmul.f32 -1.442695, %v3215_v42 }
 0x268   : > { %v2367_v56 = vpop.eup %2366  ;;  %v3438_v11 = vmul.f32 %v2365_v22, %v3270_v44  ;;  %2386 = vtanh.f32 %v1682_v33  ;;  %1731 = vst.msk [vmem:[%s3398_s10 + $0x28] sm:$0xff] %vm1715_vm12, %v1682_v33  ;;  %v2121_v44 = vadd.f32 %v3333_v60, %v3128_v43  ;;  %v1608_v43 = vadd.f32 1.0, %v3278_v34 }
 0x269   : > { %v2369_v16 = vpop.eup %2368  ;;  %2388 = vrcp.f32 %v1521_v35  ;;  %v1524_v53 = vadd.f32 1.0, %v2367_v56 }
 0x26a   : > { %v2371_v10 = vpop.eup %2370  ;;  %2390 = vrcp.f32 %v1522_v4  ;;  %v1525_v51 = vadd.f32 1.0, %v2369_v16  ;;  %v1977_v3 = vmul.f32 -1.442695, %v2121_v44 }
 0x26b   : > { %v2373_v29 = vpop.eup %2372  ;;  %2392 = vrcp.f32 %v1524_v53 }
 0x26c   : > { %v2375_v5 = vpop.eup %2374  ;;  %2394 = vrcp.f32 %v1525_v51  ;;  %v1613_v38 = vadd.f32 1.0, %v2373_v29 }
 0x26d   : > { %v2377_v45 = vpop.eup %2376  ;;  %2396 = vpow2.f32 %v1974_v26 }
 0x26e   : > { %v2379_v1 = vpop.eup %2378  ;;  %2398 = vrcp.f32 %v1613_v38  ;;  %v1607_v46 = vadd.f32 1.0, %v2377_v45  ;;  %v1612_v45 = vadd.f32 1.0, %v3310_v32 }
 0x26f   : > { %v2381_v2 = vpop.eup %2380  ;;  %v1616_v19 = vadd.f32 1.0, %v2379_v1  ;;  %2400 = vpow2.f32 %v1976_v52 }
 0x270   : > { %v2383_v7 = vpop.eup %2382  ;;  %2402 = vrcp.f32 %v1607_v46  ;;  %v1610_v21 = vadd.f32 1.0, %v2381_v2 }
 0x271   : > { %v2385_v12 = vpop.eup %2384  ;;  %2404 = vrcp.f32 %v1616_v19  ;;  %v1527_v31 = vadd.f32 1.0, %v2383_v7 }
 0x272   : > { %v2387_v25 = vpop.eup %2386  ;;  %2406 = vrcp.f32 %v1610_v21 }
 0x273   : > { %v2389_v60 = vpop.eup %2388  ;;  %2408 = vrcp.f32 %v1527_v31 }
 0x274   : > { %v2391_v39 = vpop.eup %2390  ;;  %v1653_v36 = vmul.f32 %v2389_v60, %v3379_v15  ;;  %2410 = vpow2.f32 %v1977_v3 }
 0x275   : > { %v2393_v13 = vpop.eup %2392  ;;  %2412 = vrcp.f32 %v1606_v63  ;;  %v1654_v55 = vmul.f32 %v2391_v39, %v3382_v14 }
 0x276   : > { %v2395_v28 = vpop.eup %2394  ;;  %2414 = vrcp.f32 %v1608_v43  ;;  %v1677_v58 = vadd.f32 %v3345_v17, %v1653_v36  ;;  %v1656_v34 = vmul.f32 %v2393_v13, %v3386_v30 }
 0x277   : > { %v2397_v48 = vpop.eup %2396  ;;  %2416 = vrcp.f32 %v1609_v20  ;;  %v1678_v18 = vadd.f32 %v3360_v24, %v1654_v55  ;;  %v1657_v47 = vmul.f32 %v2395_v28, %v3389_v49 }
 0x278   : > { %v2399_v15 = vpop.eup %2398  ;;  %2418 = vtanh.f32 %v1677_v58  ;;  %v1680_v17 = vadd.f32 %v3366_v59, %v1656_v34  ;;  %v1528_v14 = vadd.f32 1.0, %v2397_v48  ;;  %1726 = vst [vmem:[%s3398_s10] sm:$0xff] %v1677_v58 }
 0x279   : > { %v2401_v30 = vpop.eup %2400  ;;  %2420 = vtanh.f32 %v1678_v18  ;;  %v1681_v24 = vadd.f32 %v3371_v27, %v1657_v47  ;;  %v1709_v35 = vmul.f32 %v2399_v15, %v2371_v10  ;;  %1727 = vst [vmem:[%s3398_s10 + $0x8] sm:$0xff] %v1678_v18  ;;  %v1611_v27 = vadd.f32 1.0, %v3305_v6 }
 0x27a   : > { %v2403_v49 = vpop.eup %2402  ;;  %2422 = vtanh.f32 %v1680_v17  ;;  %v1530_v61 = vadd.f32 1.0, %v2401_v30  ;;  %1729 = vst [vmem:[%s3398_s10 + $0x18] sm:$0xff] %v1680_v17 }
 0x27b   : > { %v2405_v33 = vpop.eup %2404  ;;  %2424 = vtanh.f32 %v1681_v24  ;;  %1722 = vst.msk [vmem:[%s3457_s13 + $0x40] sm:$0xff] %vm1715_vm12, %v1709_v35  ;;  %v1703_v59 = vmul.f32 %v2403_v49, %v2375_v5  ;;  %1730 = vst [vmem:[%s3398_s10 + $0x20] sm:$0xff] %v1681_v24 }
 0x27c   : > { %v2407_v4 = vpop.eup %2406  ;;  %v1712_v22 = vmul.f32 %v2405_v33, %v2385_v12  ;;  %2426 = vrcp.f32 %v1528_v14 }
 0x27d   : > { %v2409_v54 = vpop.eup %2408  ;;  %1716 = vst.msk [vmem:[%s3457_s13 + $0x10] sm:$0xff] %vm1715_vm12, %v1703_v59  ;;  %v1706_v42 = vmul.f32 %v2407_v4, %v2387_v25  ;;  %2428 = vrcp.f32 %v1530_v61 }
 0x27e   : > { %v2411_v56 = vpop.eup %2410  ;;  %2430 = vpow2.f32 %v1989_v23  ;;  %1725 = vst.msk [vmem:[%s3457_s13 + $0x58] sm:$0xff] %vm1715_vm12, %v1712_v22  ;;  %v1659_v16 = vmul.f32 %v2409_v54, %v3392_v37 }
 0x27f   : > { %v2413_v53 = vpop.eup %2412  ;;  %1719 = vst.msk [vmem:[%s3457_s13 + $0x28] sm:$0xff] %vm1715_vm12, %v1706_v42  ;;  %v1531_v26 = vadd.f32 1.0, %v2411_v56  ;;  %2432 = vrcp.f32 %v1611_v27 }
 0x280   : > { %v2415_v6 = vpop.eup %2414  ;;  %v1683_v10 = vadd.f32 %v3418_v41, %v1659_v16  ;;  %v1614_v41 = vadd.f32 1.0, %v3315_v57 }
 0x281   : > { %v2417_v51 = vpop.eup %2416  ;;  %2434 = vrcp.f32 %v1531_v26 }
 0x282   : > { %v2419_v29 = vpop.eup %2418  ;;  %2436 = vtanh.f32 %v1683_v10  ;;  %1732 = vst [vmem:[%s3398_s10 + $0x30] sm:$0xff] %v1683_v10 }
 0x283   : > { %v2421_v52 = vpop.eup %2420  ;;  %v1701_v37 = vmul.f32 %v2419_v29, %v3321_v40  ;;  %2438 = vrcp.f32 %v1612_v45 }
 0x284   : > { %v2423_v5 = vpop.eup %2422  ;;  %v1702_v38 = vmul.f32 %v2421_v52, %v2413_v53  ;;  %2440 = vrcp.f32 %v1614_v41 }
 0x285   : > { %v2425_v44 = vpop.eup %2424  ;;  %1713 = vst [vmem:[%s3457_s13] sm:$0xff] %v1701_v37  ;;  %v1704_v1 = vmul.f32 %v2423_v5, %v2415_v6 }
 0x286   : > { %v2427_v46 = vpop.eup %2426  ;;  %1714 = vst [vmem:[%s3457_s13 + $0x8] sm:$0xff] %v1702_v38  ;;  %v1705_v2 = vmul.f32 %v2425_v44, %v2417_v51 }
 0x287   : > { %v2429_v19 = vpop.eup %2428  ;;  %1717 = vst [vmem:[%s3457_s13 + $0x18] sm:$0xff] %v1704_v1  ;;  %v1660_v7 = vmul.f32 %v2427_v46, %v3403_v50 }
 0x288   : > { %v2431_v21 = vpop.eup %2430  ;;  %1718 = vst [vmem:[%s3457_s13 + $0x20] sm:$0xff] %v1705_v2  ;;  %v1662_v40 = vmul.f32 %v2429_v19, %v3406_v9 }
 0x289   : > { %v1684_v32 = vadd.f32 %v3422_v0, %v1660_v7  ;;  %v2433_v3 = vpop.eup %2432  ;;  %v1615_v63 = vadd.f32 1.0, %v2431_v21 }
 0x28a   : > { %v1686_v57 = vadd.f32 %v3431_v8, %v1662_v40 }
 0x28b   : > { %v2435_v12 = vpop.eup %2434  ;;  %2442 = vtanh.f32 %v1684_v32  ;;  %1733 = vst [vmem:[%s3398_s10 + $0x38] sm:$0xff] %v1684_v32 }
 0x28c   : > { %v2437_v31 = vpop.eup %2436  ;;  %2444 = vtanh.f32 %v1686_v57  ;;  %v1663_v50 = vmul.f32 %v2435_v12, %v3409_v62  ;;  %1735 = vst [vmem:[%s3398_s10 + $0x48] sm:$0xff] %v1686_v57 }
 0x28d   : > { %v1707_v9 = vmul.f32 %v2437_v31, %v2433_v3  ;;  %2446 = vrcp.f32 %v1615_v63  ;;  %v2439_v0 = vpop.eup %2438 }
 0x28e   : > { %v1687_v25 = vadd.f32 %v3438_v11, %v1663_v50  ;;  %v2441_v8 = vpop.eup %2440 }
 0x28f   : > { %1720 = vst [vmem:[%s3457_s13 + $0x30] sm:$0xff] %v1707_v9 }
 0x290   : > { %2448 = vtanh.f32 %v1687_v25  ;;  %1736 = vst [vmem:[%s3398_s10 + $0x50] sm:$0xff] %v1687_v25 }
 0x295   : > { %v2443_v43 = vpop.eup %2442 }
 0x296   : > { %v2445_v60 = vpop.eup %2444  ;;  %v1708_v20 = vmul.f32 %v2443_v43, %v2439_v0 }
 0x297   : > { %v1710_v39 = vmul.f32 %v2445_v60, %v2441_v8  ;;  %v2447_v36 = vpop.eup %2446 }
 0x298   : > { %1721 = vst [vmem:[%s3457_s13 + $0x38] sm:$0xff] %v1708_v20 }
 0x299   : > { %1723 = vst [vmem:[%s3457_s13 + $0x48] sm:$0xff] %v1710_v39 }
 0x29a   : > { %v2449_v62 = vpop.eup %2448 }
 0x29b   : > { %v1711_v13 = vmul.f32 %v2449_v62, %v2447_v36 }
 0x29d   : > { %1724 = vst [vmem:[%s3457_s13 + $0x50] sm:$0xff] %v1711_v13 }
 0x29e PF: > { %s16_s20 = sadd.s32 1, %s2472_s20   ;;  %s3513_s18 = smov %s2468_s19 }
 0x29f   : > { %p13_p5 = scmp.ge.s32.totalorder %s16_s20, 4   ;;  %s3514_s19 = smov %s3516_s21 }
 0x2a1   :  { %15 = sbr.rel (!%p13_p5) target bundleno = 2 (0x2), region = 81 }

</bundles_post_ra>
